<compile_context>
chip_gen: v5e
topology: v5e:2x2
jax: 0.10.0
libtpu: 0.0.40
codegen_flags: <defaults>
</compile_context>

<pallas_src>
import jax
import jax.numpy as jnp
from jax.experimental import pallas as pl
from jax.experimental.pallas import tpu as pltpu

LEAKY_SLOPE = 0.2
BN_EPS = 1e-5


def _round_up(x, m):
    return (x + m - 1) // m * m


def _leaky(v):
    return jnp.where(v > 0, v, LEAKY_SLOPE * v)


# ----------------------------------------------------------------------------
# Pallas kernels (all epilogue math in f32 vregs; bf16 only at loads / stores)
# ----------------------------------------------------------------------------
def _conv_leaky_kernel(a_ref, w_ref, o_ref):
    """(tm2, rK) x (rK, rC) MXU matmul with fused LeakyReLU, lane-dense store."""
    acc = jnp.dot(a_ref[...], w_ref[...], preferred_element_type=jnp.float32)
    o_ref[...] = _leaky(acc).astype(o_ref.dtype)


def _conv_stats_kernel(a_ref, w_ref, o_ref, psum_ref, psq_ref):
    """Matmul + fused per-tile BatchNorm partial stats (sum, sum-of-squares)."""
    acc = jnp.dot(a_ref[...], w_ref[...], preferred_element_type=jnp.float32)
    o_ref[...] = acc.astype(o_ref.dtype)
    s = jnp.sum(acc, axis=0, keepdims=True)         # (1, rC)
    q = jnp.sum(acc * acc, axis=0, keepdims=True)   # (1, rC)
    # Duplicate across 8 sublanes so the partial-stat block is (8, rC) aligned.
    psum_ref[...] = jnp.broadcast_to(s, psum_ref.shape)
    psq_ref[...] = jnp.broadcast_to(q, psq_ref.shape)


def _bn_leaky_kernel(x_ref, scale_ref, shift_ref, o_ref):
    """y = leaky(x * scale + shift) on the lane-folded activation."""
    x = x_ref[...].astype(jnp.float32)
    y = x * scale_ref[...] + shift_ref[...]
    o_ref[...] = _leaky(y).astype(o_ref.dtype)


def _head_kernel(a_ref, w_ref, o_ref):
    """conv4 (Cout=1) + AdaptiveAvgPool2d(1) + LeakyReLU + Sigmoid, one batch/step."""
    n = pl.program_id(0)
    x = a_ref[0].astype(jnp.float32)                        # (HW, K)
    pooled = jnp.mean(x, axis=0, keepdims=True)             # (1, K): pool∘conv == conv∘pool
    v = jnp.sum(pooled * w_ref[...], axis=1, keepdims=True)  # (1, 1)
    v = _leaky(v)
    sig = 1.0 / (1.0 + jnp.exp(-v))
    o_ref[pl.ds(n, 1), :] = sig.astype(o_ref.dtype)


# ----------------------------------------------------------------------------
# Wrappers (glue: im2col, lane folding, pallas_call plumbing)
# ----------------------------------------------------------------------------
def _im2col(x, kh, kw, stride, pad):
    """x: (N,H,W,C) -> patches (N,Ho,Wo,kh*kw*C) with patch order (kh, kw, Cin)."""
    N, H, W, C = x.shape
    xp = jnp.pad(x, ((0, 0), (pad, pad), (pad, pad), (0, 0)))
    Ho = (H + 2 * pad - kh) // stride + 1
    Wo = (W + 2 * pad - kw) // stride + 1
    cols = []
    for i in range(kh):
        for j in range(kw):
            cols.append(xp[:, i:i + stride * Ho:stride, j:j + stride * Wo:stride, :])
    patches = jnp.stack(cols, axis=3)                # (N, Ho, Wo, kh*kw, C)
    return patches.reshape(N, Ho, Wo, kh * kw * C), Ho, Wo


def _conv_matmul_prep(x, w, stride, pad, tm2):
    """Build lane-folded bf16 matmul operands for a conv (see module docstring)."""
    Cout, Cin, kh, kw = w.shape
    # Pad Cin to a multiple of 4 -> K = kh*kw*Cin is 64-aligned (zero rows/cols: free).
    Cp = _round_up(Cin, 4)
    if Cp != Cin:
        x = jnp.pad(x, ((0, 0), (0, 0), (0, 0), (0, Cp - Cin)))
        w = jnp.pad(w, ((0, 0), (0, Cp - Cin), (0, 0), (0, 0)))
    x = x.astype(jnp.bfloat16)

    patches, Ho, Wo = _im2col(x, kh, kw, stride, pad)
    N = x.shape[0]
    K = kh * kw * Cp
    M = N * Ho * Wo
    A = patches.reshape(M, K)

    r = max(1, -(-128 // Cout))            # fold factor: stored lanes r*Cout >= 128
    r = min(r, max(1, 4096 // K))          # keep the folded contraction depth sane
    rK, rC = r * K, r * Cout

    M2 = -(-M // r)                        # folded rows
    tm2_eff = min(tm2, _round_up(M2, 8))   # big, sublane-aligned row tiles
    M2p = _round_up(M2, tm2_eff)
    Mp = M2p * r
    if Mp != M:
        A = jnp.pad(A, ((0, Mp - M), (0, 0)))   # zero rows -> no effect on output/stats
    A2 = A.reshape(M2p, rK)                     # free contiguous reshape

    Wm = jnp.transpose(w, (2, 3, 1, 0)).reshape(K, Cout).astype(jnp.bfloat16)
    W2 = jnp.kron(jnp.eye(r, dtype=jnp.bfloat16), Wm)       # (rK, rC) block-diagonal

    meta = dict(N=N, Ho=Ho, Wo=Wo, C=Cout, r=r, rK=rK, rC=rC,
                M=M, M2p=M2p, tm2=tm2_eff, grid=M2p // tm2_eff)
    return A2, W2, meta


def _unfold(out2, m):
    """(M2p, r*C) folded conv output -> (N, Ho, Wo, C)."""
    y = out2.reshape(m['M2p'] * m['r'], m['C'])[:m['M']]
    return y.reshape(m['N'], m['Ho'], m['Wo'], m['C'])


def conv2d_leaky(x, w, stride, pad, tm2=512):
    """Bias-free Conv2d fused with LeakyReLU(0.2).  Returns NHWC bf16."""
    A2, W2, m = _conv_matmul_prep(x, w, stride, pad, tm2)
    out2 = pl.pallas_call(
        _conv_leaky_kernel,
        out_shape=jax.ShapeDtypeStruct((m['M2p'], m['rC']), jnp.bfloat16),
        grid=(m['grid'],),
        in_specs=[pl.BlockSpec((m['tm2'], m['rK']), lambda i: (i, 0)),
                  pl.BlockSpec((m['rK'], m['rC']), lambda i: (0, 0))],
        out_specs=pl.BlockSpec((m['tm2'], m['rC']), lambda i: (i, 0)),
        compiler_params=pltpu.CompilerParams(dimension_semantics=("parallel",)),
    )(A2, W2)
    return _unfold(out2, m)


def conv2d_bn_leaky(x, w, gamma, beta, stride, pad, tm2=512):
    """Conv2d -> BatchNorm2d (training-mode stats, fused into the conv epilogue)
    -> LeakyReLU(0.2).  Returns NHWC bf16."""
    A2, W2, m = _conv_matmul_prep(x, w, stride, pad, tm2)
    G, r, C = m['grid'], m['r'], m['C']
    rK, rC, tm2e = m['rK'], m['rC'], m['tm2']

    conv2, psum, psq = pl.pallas_call(
        _conv_stats_kernel,
        out_shape=(jax.ShapeDtypeStruct((m['M2p'], rC), jnp.bfloat16),
                   jax.ShapeDtypeStruct((G * 8, rC), jnp.float32),
                   jax.ShapeDtypeStruct((G * 8, rC), jnp.float32)),
        grid=(G,),
        in_specs=[pl.BlockSpec((tm2e, rK), lambda i: (i, 0)),
                  pl.BlockSpec((rK, rC), lambda i: (0, 0))],
        out_specs=(pl.BlockSpec((tm2e, rC), lambda i: (i, 0)),
                   pl.BlockSpec((8, rC), lambda i: (i, 0)),
                   pl.BlockSpec((8, rC), lambda i: (i, 0))),
        compiler_params=pltpu.CompilerParams(dimension_semantics=("parallel",)),
    )(A2, W2)

    # Finish BN statistics from the tiny per-tile partials (padded rows are exact
    # zeros, so they contribute nothing; divisor is the true element count M).
    s = psum.reshape(G, 8, r, C)[:, 0].sum(axis=(0, 1))
    q = psq.reshape(G, 8, r, C)[:, 0].sum(axis=(0, 1))
    mean = s / m['M']
    var = jnp.maximum(q / m['M'] - mean * mean, 0.0)      # clamp: cancellation safety
    inv = jax.lax.rsqrt(var + BN_EPS)
    scale = gamma.astype(jnp.float32) * inv
    shift = beta.astype(jnp.float32) - mean * scale
    scale_r = jnp.tile(scale, r).reshape(1, rC)           # per-lane params, folded layout
    shift_r = jnp.tile(shift, r).reshape(1, rC)

    y2 = pl.pallas_call(
        _bn_leaky_kernel,
        out_shape=jax.ShapeDtypeStruct((m['M2p'], rC), jnp.bfloat16),
        grid=(G,),
        in_specs=[pl.BlockSpec((tm2e, rC), lambda i: (i, 0)),
                  pl.BlockSpec((1, rC), lambda i: (0, 0)),
                  pl.BlockSpec((1, rC), lambda i: (0, 0))],
        out_specs=pl.BlockSpec((tm2e, rC), lambda i: (i, 0)),
        compiler_params=pltpu.CompilerParams(dimension_semantics=("parallel",)),
    )(conv2, scale_r, shift_r)
    return _unfold(y2, m)


def conv2d_head(x, w):
    """Conv2d(4ndf, 1, 4, 1, 0) + AdaptiveAvgPool2d(1) + LeakyReLU + Sigmoid,
    fused into a single kernel (one grid step per batch element)."""
    Cout, Cin, kh, kw = w.shape
    x = x.astype(jnp.bfloat16)
    patches, Ho, Wo = _im2col(x, kh, kw, 1, 0)
    N = x.shape[0]
    K = kh * kw * Cin
    HW = Ho * Wo
    A = patches.reshape(N, HW, K)
    wv = jnp.transpose(w, (2, 3, 1, 0)).reshape(K, Cout).T.astype(jnp.float32)  # (1, K)

    out = pl.pallas_call(
        _head_kernel,
        out_shape=jax.ShapeDtypeStruct((N, 1), jnp.float32),
        grid=(N,),
        in_specs=[pl.BlockSpec((1, HW, K), lambda n: (n, 0, 0)),
                  pl.BlockSpec((1, K), lambda n: (0, 0))],
        # Full (N, 1) output block kept resident; each step writes its own row.
        out_specs=pl.BlockSpec((N, 1), lambda n: (0, 0)),
        compiler_params=pltpu.CompilerParams(dimension_semantics=("arbitrary",)),
    )(A, wv)
    return out.reshape(-1)


def discriminator_forward(x_nchw, params):
    x = jnp.transpose(x_nchw, (0, 2, 3, 1))                            # NCHW -> NHWC
    x = conv2d_leaky(x, params["w1"], stride=2, pad=1)
    x = conv2d_bn_leaky(x, params["w2"], params["g2"], params["b2"], stride=2, pad=1)
    x = conv2d_bn_leaky(x, params["w3"], params["g3"], params["b3"], stride=2, pad=1)
    return conv2d_head(x, params["w4"])                                # == x.view(-1)


# ----------------------------------------------------------------------------
# Pure-JAX reference (f32 everywhere) for validation
# ----------------------------------------------------------------------------
def _ref_forward(x_nchw, params):
    x = jnp.transpose(x_nchw, (0, 2, 3, 1)).astype(jnp.float32)

    def conv(x, w, s, p):
        return jax.lax.conv_general_dilated(
            x, jnp.transpose(w, (2, 3, 1, 0)), (s, s), [(p, p), (p, p)],
            dimension_numbers=("NHWC", "HWIO", "NHWC"))

    def bn_leaky(x, g, b):
        mu = jnp.mean(x, axis=(0, 1, 2), keepdims=True)
        var = jnp.mean((x - mu) ** 2, axis=(0, 1, 2), keepdims=True)
        y = (x - mu) * jax.lax.rsqrt(var + BN_EPS) * g + b
        return jnp.where(y > 0, y, LEAKY_SLOPE * y)

    leaky = lambda v: jnp.where(v > 0, v, LEAKY_SLOPE * v)
    x = leaky(conv(x, params["w1"], 2, 1))
    x = bn_leaky(conv(x, params["w2"], 2, 1), params["g2"], params["b2"])
    x = bn_leaky(conv(x, params["w3"], 2, 1), params["g3"], params["b3"])
    x = conv(x, params["w4"], 1, 0)
    x = jnp.mean(x, axis=(1, 2))
    x = jax.nn.sigmoid(leaky(x))
    return x.reshape(-1)


# ----------------------------------------------------------------------------
if __name__ == "__main__":
    # Small, module-consistent shapes: nc=3 input channels, ndf=16, 32x32 images.
    N, NC, IMG, NDF = 2, 3, 32, 16

    key = jax.random.PRNGKey(0)
    k = jax.random.split(key, 9)
    params = {
        # PyTorch Conv2d weight layout (Cout, Cin, kh, kw); DCGAN-style N(0, 0.02) init.
        "w1": 0.02 * jax.random.normal(k[0], (NDF,     NC,      4, 4), jnp.float32),
        "w2": 0.02 * jax.random.normal(k[1], (NDF * 2, NDF,     4, 4), jnp.float32),
        "w3": 0.02 * jax.random.normal(k[2], (NDF * 4, NDF * 2, 4, 4), jnp.float32),
        "w4": 0.02 * jax.random.normal(k[3], (1,       NDF * 4, 4, 4), jnp.float32),
        # BN affine parameters (perturbed from 1/0 to exercise the affine path).
        "g2": 1.0 + 0.1 * jax.random.normal(k[4], (NDF * 2,), jnp.float32),
        "b2": 0.05 * jax.random.normal(k[5], (NDF * 2,), jnp.float32),
        "g3": 1.0 + 0.1 * jax.random.normal(k[6], (NDF * 4,), jnp.float32),
        "b3": 0.05 * jax.random.normal(k[7], (NDF * 4,), jnp.float32),
    }
    x = jax.random.normal(k[8], (N, NC, IMG, IMG), jnp.float32)   # NCHW like PyTorch

    fwd = jax.jit(discriminator_forward)
    out = jax.block_until_ready(fwd(x, params))
    ref = jax.block_until_ready(_ref_forward(x, params))

    assert out.shape == (N,), out.shape
    # bf16 matmul operands (f32 accumulation) vs the all-f32 XLA reference.
    assert jnp.allclose(out, ref, rtol=2e-2, atol=2e-2), (out, ref)
    print("KERNEL_OK")
</pallas_src>

<mosaic_0001>
module attributes {stable_mosaic.version = 11 : i64} {
  func.func @_conv_leaky_kernel(%arg0: i32, %arg1: memref<64x512xbf16, #tpu.memory_space<vmem>>, %arg2: memref<512x128xbf16, #tpu.memory_space<vmem>>, %arg3: memref<64x128xbf16, #tpu.memory_space<vmem>>) attributes {dimension_semantics = [#tpu.dimension_semantics<parallel>], iteration_bounds = array<i64: 1>, scalar_prefetch = 0 : i64, scratch_operands = 0 : i64, tpu.core_type = #tpu.core_type<tc>, window_params = [{transform_indices = @transform_0, window_bounds = array<i64: 64, 512>}, {pipeline_mode = #tpu.pipeline_mode<synchronous>, transform_indices = @transform_1, window_bounds = array<i64: 512, 128>}, {transform_indices = @transform_2, window_bounds = array<i64: 64, 128>}]} {
    %c0 = arith.constant 0 : index
    %c0_0 = arith.constant 0 : index
    %0 = vector.load %arg1[%c0, %c0_0] : memref<64x512xbf16, #tpu.memory_space<vmem>>, vector<64x512xbf16>
    %c0_1 = arith.constant 0 : index
    %c0_2 = arith.constant 0 : index
    %1 = vector.load %arg2[%c0_1, %c0_2] : memref<512x128xbf16, #tpu.memory_space<vmem>>, vector<512x128xbf16>
    %cst = arith.constant dense<0.000000e+00> : vector<64x128xf32>
    %2 = tpu.matmul %0, %1, %cst {dimension_numbers = #tpu.dot_dimension_numbers<[1], [0], [0], [1], [0, 0, 1, 1], [], []>} : vector<64x512xbf16>, vector<512x128xbf16>, vector<64x128xf32> -> vector<64x128xf32>
    %cst_3 = arith.constant 0.000000e+00 : f32
    %3 = vector.broadcast %cst_3 : f32 to vector<64x128xf32>
    %4 = arith.cmpf ogt, %2, %3 : vector<64x128xf32>
    %cst_4 = arith.constant 2.000000e-01 : f32
    %5 = vector.broadcast %cst_4 : f32 to vector<64x128xf32>
    %6 = arith.mulf %5, %2 : vector<64x128xf32>
    %7 = arith.select %4, %2, %6 : vector<64x128xi1>, vector<64x128xf32>
    %8 = arith.truncf %7 : vector<64x128xf32> to vector<64x128xbf16>
    %c0_5 = arith.constant 0 : index
    %c0_6 = arith.constant 0 : index
    %9 = vector.load %arg3[%c0_5, %c0_6] : memref<64x128xbf16, #tpu.memory_space<vmem>>, vector<64x128xbf16>
    tpu.vector_store %arg3[%c0_5, %c0_6], %8 {strides = array<i32>} : memref<64x128xbf16, #tpu.memory_space<vmem>>, vector<64x128xbf16>,
    return
  }
  func.func @transform_0(%arg0: i32) -> (i32, i32) {
    %c0_i32 = arith.constant 0 : i32
    %c0_i32_0 = arith.constant 0 : i32
    return %arg0, %c0_i32 : i32, i32
  }
  func.func @transform_1(%arg0: i32) -> (i32, i32) {
    %c0_i32 = arith.constant 0 : i32
    %c0_i32_0 = arith.constant 0 : i32
    %c0_i32_1 = arith.constant 0 : i32
    return %c0_i32, %c0_i32_0 : i32, i32
  }
  func.func @transform_2(%arg0: i32) -> (i32, i32) {
    %c0_i32 = arith.constant 0 : i32
    %c0_i32_0 = arith.constant 0 : i32
    return %arg0, %c0_i32 : i32, i32
  }
}

module attributes {stable_mosaic.version = 11 : i64} {
  func.func @_conv_stats_kernel(%arg0: i32, %arg1: memref<32x1024xbf16, #tpu.memory_space<vmem>>, %arg2: memref<1024x128xbf16, #tpu.memory_space<vmem>>, %arg3: memref<32x128xbf16, #tpu.memory_space<vmem>>, %arg4: memref<8x128xf32, #tpu.memory_space<vmem>>, %arg5: memref<8x128xf32, #tpu.memory_space<vmem>>) attributes {dimension_semantics = [#tpu.dimension_semantics<parallel>], iteration_bounds = array<i64: 1>, scalar_prefetch = 0 : i64, scratch_operands = 0 : i64, tpu.core_type = #tpu.core_type<tc>, window_params = [{transform_indices = @transform_0, window_bounds = array<i64: 32, 1024>}, {pipeline_mode = #tpu.pipeline_mode<synchronous>, transform_indices = @transform_1, window_bounds = array<i64: 1024, 128>}, {transform_indices = @transform_2, window_bounds = array<i64: 32, 128>}, {transform_indices = @transform_3, window_bounds = array<i64: 8, 128>}, {transform_indices = @transform_4, window_bounds = array<i64: 8, 128>}]} {
    %c0 = arith.constant 0 : index
    %c0_0 = arith.constant 0 : index
    %0 = vector.load %arg1[%c0, %c0_0] : memref<32x1024xbf16, #tpu.memory_space<vmem>>, vector<32x1024xbf16>
    %c0_1 = arith.constant 0 : index
    %c0_2 = arith.constant 0 : index
    %1 = vector.load %arg2[%c0_1, %c0_2] : memref<1024x128xbf16, #tpu.memory_space<vmem>>, vector<1024x128xbf16>
    %cst = arith.constant dense<0.000000e+00> : vector<32x128xf32>
    %2 = tpu.matmul %0, %1, %cst {dimension_numbers = #tpu.dot_dimension_numbers<[1], [0], [0], [1], [0, 0, 1, 1], [], []>} : vector<32x1024xbf16>, vector<1024x128xbf16>, vector<32x128xf32> -> vector<32x128xf32>
    %3 = arith.truncf %2 : vector<32x128xf32> to vector<32x128xbf16>
    %c0_3 = arith.constant 0 : index
    %c0_4 = arith.constant 0 : index
    %4 = vector.load %arg3[%c0_3, %c0_4] : memref<32x128xbf16, #tpu.memory_space<vmem>>, vector<32x128xbf16>
    tpu.vector_store %arg3[%c0_3, %c0_4], %3 {strides = array<i32>} : memref<32x128xbf16, #tpu.memory_space<vmem>>, vector<32x128xbf16>,
    %cst_5 = arith.constant dense<0.000000e+00> : vector<128xf32>
    %5 = vector.multi_reduction <add>, %2, %cst_5 [0] : vector<32x128xf32> to vector<128xf32>
    %6 = vector.shape_cast %5 : vector<128xf32> to vector<1x128xf32>
    %7 = arith.mulf %2, %2 : vector<32x128xf32>
    %cst_6 = arith.constant dense<0.000000e+00> : vector<128xf32>
    %8 = vector.multi_reduction <add>, %7, %cst_6 [0] : vector<32x128xf32> to vector<128xf32>
    %9 = vector.shape_cast %8 : vector<128xf32> to vector<1x128xf32>
    %10 = vector.shape_cast %6 : vector<1x128xf32> to vector<1x128xf32>
    %11 = vector.broadcast %10 : vector<1x128xf32> to vector<8x128xf32>
    %c0_7 = arith.constant 0 : index
    %c0_8 = arith.constant 0 : index
    %12 = vector.load %arg4[%c0_7, %c0_8] : memref<8x128xf32, #tpu.memory_space<vmem>>, vector<8x128xf32>
    tpu.vector_store %arg4[%c0_7, %c0_8], %11 {strides = array<i32>} : memref<8x128xf32, #tpu.memory_space<vmem>>, vector<8x128xf32>,
    %13 = vector.shape_cast %9 : vector<1x128xf32> to vector<1x128xf32>
    %14 = vector.broadcast %13 : vector<1x128xf32> to vector<8x128xf32>
    %c0_9 = arith.constant 0 : index
    %c0_10 = arith.constant 0 : index
    %15 = vector.load %arg5[%c0_9, %c0_10] : memref<8x128xf32, #tpu.memory_space<vmem>>, vector<8x128xf32>
    tpu.vector_store %arg5[%c0_9, %c0_10], %14 {strides = array<i32>} : memref<8x128xf32, #tpu.memory_space<vmem>>, vector<8x128xf32>,
    return
  }
  func.func @transform_0(%arg0: i32) -> (i32, i32) {
    %c0_i32 = arith.constant 0 : i32
    %c0_i32_0 = arith.constant 0 : i32
    return %arg0, %c0_i32 : i32, i32
  }
  func.func @transform_1(%arg0: i32) -> (i32, i32) {
    %c0_i32 = arith.constant 0 : i32
    %c0_i32_0 = arith.constant 0 : i32
    %c0_i32_1 = arith.constant 0 : i32
    return %c0_i32, %c0_i32_0 : i32, i32
  }
  func.func @transform_2(%arg0: i32) -> (i32, i32) {
    %c0_i32 = arith.constant 0 : i32
    %c0_i32_0 = arith.constant 0 : i32
    return %arg0, %c0_i32 : i32, i32
  }
  func.func @transform_3(%arg0: i32) -> (i32, i32) {
    %c0_i32 = arith.constant 0 : i32
    %c0_i32_0 = arith.constant 0 : i32
    return %arg0, %c0_i32 : i32, i32
  }
  func.func @transform_4(%arg0: i32) -> (i32, i32) {
    %c0_i32 = arith.constant 0 : i32
    %c0_i32_0 = arith.constant 0 : i32
    return %arg0, %c0_i32 : i32, i32
  }
}

module attributes {stable_mosaic.version = 11 : i64} {
  func.func @_bn_leaky_kernel(%arg0: i32, %arg1: memref<32x128xbf16, #tpu.memory_space<vmem>>, %arg2: memref<1x128xf32, #tpu.memory_space<vmem>>, %arg3: memref<1x128xf32, #tpu.memory_space<vmem>>, %arg4: memref<32x128xbf16, #tpu.memory_space<vmem>>) attributes {dimension_semantics = [#tpu.dimension_semantics<parallel>], iteration_bounds = array<i64: 1>, scalar_prefetch = 0 : i64, scratch_operands = 0 : i64, tpu.core_type = #tpu.core_type<tc>, window_params = [{transform_indices = @transform_0, window_bounds = array<i64: 32, 128>}, {pipeline_mode = #tpu.pipeline_mode<synchronous>, transform_indices = @transform_1, window_bounds = array<i64: 1, 128>}, {pipeline_mode = #tpu.pipeline_mode<synchronous>, transform_indices = @transform_2, window_bounds = array<i64: 1, 128>}, {transform_indices = @transform_3, window_bounds = array<i64: 32, 128>}]} {
    %c0 = arith.constant 0 : index
    %c0_0 = arith.constant 0 : index
    %0 = vector.load %arg1[%c0, %c0_0] : memref<32x128xbf16, #tpu.memory_space<vmem>>, vector<32x128xbf16>
    %1 = arith.extf %0 : vector<32x128xbf16> to vector<32x128xf32>
    %c0_1 = arith.constant 0 : index
    %c0_2 = arith.constant 0 : index
    %2 = vector.load %arg2[%c0_1, %c0_2] : memref<1x128xf32, #tpu.memory_space<vmem>>, vector<1x128xf32>
    %3 = vector.broadcast %2 : vector<1x128xf32> to vector<32x128xf32>
    %4 = arith.mulf %1, %3 : vector<32x128xf32>
    %c0_3 = arith.constant 0 : index
    %c0_4 = arith.constant 0 : index
    %5 = vector.load %arg3[%c0_3, %c0_4] : memref<1x128xf32, #tpu.memory_space<vmem>>, vector<1x128xf32>
    %6 = vector.broadcast %5 : vector<1x128xf32> to vector<32x128xf32>
    %7 = arith.addf %4, %6 : vector<32x128xf32>
    %cst = arith.constant 0.000000e+00 : f32
    %8 = vector.broadcast %cst : f32 to vector<32x128xf32>
    %9 = arith.cmpf ogt, %7, %8 : vector<32x128xf32>
    %cst_5 = arith.constant 2.000000e-01 : f32
    %10 = vector.broadcast %cst_5 : f32 to vector<32x128xf32>
    %11 = arith.mulf %10, %7 : vector<32x128xf32>
    %12 = arith.select %9, %7, %11 : vector<32x128xi1>, vector<32x128xf32>
    %13 = arith.truncf %12 : vector<32x128xf32> to vector<32x128xbf16>
    %c0_6 = arith.constant 0 : index
    %c0_7 = arith.constant 0 : index
    %14 = vector.load %arg4[%c0_6, %c0_7] : memref<32x128xbf16, #tpu.memory_space<vmem>>, vector<32x128xbf16>
    tpu.vector_store %arg4[%c0_6, %c0_7], %13 {strides = array<i32>} : memref<32x128xbf16, #tpu.memory_space<vmem>>, vector<32x128xbf16>,
    return
  }
  func.func @transform_0(%arg0: i32) -> (i32, i32) {
    %c0_i32 = arith.constant 0 : i32
    %c0_i32_0 = arith.constant 0 : i32
    return %arg0, %c0_i32 : i32, i32
  }
  func.func @transform_1(%arg0: i32) -> (i32, i32) {
    %c0_i32 = arith.constant 0 : i32
    %c0_i32_0 = arith.constant 0 : i32
    %c0_i32_1 = arith.constant 0 : i32
    return %c0_i32, %c0_i32_0 : i32, i32
  }
  func.func @transform_2(%arg0: i32) -> (i32, i32) {
    %c0_i32 = arith.constant 0 : i32
    %c0_i32_0 = arith.constant 0 : i32
    %c0_i32_1 = arith.constant 0 : i32
    return %c0_i32, %c0_i32_0 : i32, i32
  }
  func.func @transform_3(%arg0: i32) -> (i32, i32) {
    %c0_i32 = arith.constant 0 : i32
    %c0_i32_0 = arith.constant 0 : i32
    return %arg0, %c0_i32 : i32, i32
  }
}

module attributes {stable_mosaic.version = 11 : i64} {
  func.func @_conv_stats_kernel(%arg0: i32, %arg1: memref<16x1024xbf16, #tpu.memory_space<vmem>>, %arg2: memref<1024x128xbf16, #tpu.memory_space<vmem>>, %arg3: memref<16x128xbf16, #tpu.memory_space<vmem>>, %arg4: memref<8x128xf32, #tpu.memory_space<vmem>>, %arg5: memref<8x128xf32, #tpu.memory_space<vmem>>) attributes {dimension_semantics = [#tpu.dimension_semantics<parallel>], iteration_bounds = array<i64: 1>, scalar_prefetch = 0 : i64, scratch_operands = 0 : i64, tpu.core_type = #tpu.core_type<tc>, window_params = [{transform_indices = @transform_0, window_bounds = array<i64: 16, 1024>}, {pipeline_mode = #tpu.pipeline_mode<synchronous>, transform_indices = @transform_1, window_bounds = array<i64: 1024, 128>}, {transform_indices = @transform_2, window_bounds = array<i64: 16, 128>}, {transform_indices = @transform_3, window_bounds = array<i64: 8, 128>}, {transform_indices = @transform_4, window_bounds = array<i64: 8, 128>}]} {
    %c0 = arith.constant 0 : index
    %c0_0 = arith.constant 0 : index
    %0 = vector.load %arg1[%c0, %c0_0] : memref<16x1024xbf16, #tpu.memory_space<vmem>>, vector<16x1024xbf16>
    %c0_1 = arith.constant 0 : index
    %c0_2 = arith.constant 0 : index
    %1 = vector.load %arg2[%c0_1, %c0_2] : memref<1024x128xbf16, #tpu.memory_space<vmem>>, vector<1024x128xbf16>
    %cst = arith.constant dense<0.000000e+00> : vector<16x128xf32>
    %2 = tpu.matmul %0, %1, %cst {dimension_numbers = #tpu.dot_dimension_numbers<[1], [0], [0], [1], [0, 0, 1, 1], [], []>} : vector<16x1024xbf16>, vector<1024x128xbf16>, vector<16x128xf32> -> vector<16x128xf32>
    %3 = arith.truncf %2 : vector<16x128xf32> to vector<16x128xbf16>
    %c0_3 = arith.constant 0 : index
    %c0_4 = arith.constant 0 : index
    %4 = vector.load %arg3[%c0_3, %c0_4] : memref<16x128xbf16, #tpu.memory_space<vmem>>, vector<16x128xbf16>
    tpu.vector_store %arg3[%c0_3, %c0_4], %3 {strides = array<i32>} : memref<16x128xbf16, #tpu.memory_space<vmem>>, vector<16x128xbf16>,
    %cst_5 = arith.constant dense<0.000000e+00> : vector<128xf32>
    %5 = vector.multi_reduction <add>, %2, %cst_5 [0] : vector<16x128xf32> to vector<128xf32>
    %6 = vector.shape_cast %5 : vector<128xf32> to vector<1x128xf32>
    %7 = arith.mulf %2, %2 : vector<16x128xf32>
    %cst_6 = arith.constant dense<0.000000e+00> : vector<128xf32>
    %8 = vector.multi_reduction <add>, %7, %cst_6 [0] : vector<16x128xf32> to vector<128xf32>
    %9 = vector.shape_cast %8 : vector<128xf32> to vector<1x128xf32>
    %10 = vector.shape_cast %6 : vector<1x128xf32> to vector<1x128xf32>
    %11 = vector.broadcast %10 : vector<1x128xf32> to vector<8x128xf32>
    %c0_7 = arith.constant 0 : index
    %c0_8 = arith.constant 0 : index
    %12 = vector.load %arg4[%c0_7, %c0_8] : memref<8x128xf32, #tpu.memory_space<vmem>>, vector<8x128xf32>
    tpu.vector_store %arg4[%c0_7, %c0_8], %11 {strides = array<i32>} : memref<8x128xf32, #tpu.memory_space<vmem>>, vector<8x128xf32>,
    %13 = vector.shape_cast %9 : vector<1x128xf32> to vector<1x128xf32>
    %14 = vector.broadcast %13 : vector<1x128xf32> to vector<8x128xf32>
    %c0_9 = arith.constant 0 : index
    %c0_10 = arith.constant 0 : index
    %15 = vector.load %arg5[%c0_9, %c0_10] : memref<8x128xf32, #tpu.memory_space<vmem>>, vector<8x128xf32>
    tpu.vector_store %arg5[%c0_9, %c0_10], %14 {strides = array<i32>} : memref<8x128xf32, #tpu.memory_space<vmem>>, vector<8x128xf32>,
    return
  }
  func.func @transform_0(%arg0: i32) -> (i32, i32) {
    %c0_i32 = arith.constant 0 : i32
    %c0_i32_0 = arith.constant 0 : i32
    return %arg0, %c0_i32 : i32, i32
  }
  func.func @transform_1(%arg0: i32) -> (i32, i32) {
    %c0_i32 = arith.constant 0 : i32
    %c0_i32_0 = arith.constant 0 : i32
    %c0_i32_1 = arith.constant 0 : i32
    return %c0_i32, %c0_i32_0 : i32, i32
  }
  func.func @transform_2(%arg0: i32) -> (i32, i32) {
    %c0_i32 = arith.constant 0 : i32
    %c0_i32_0 = arith.constant 0 : i32
    return %arg0, %c0_i32 : i32, i32
  }
  func.func @transform_3(%arg0: i32) -> (i32, i32) {
    %c0_i32 = arith.constant 0 : i32
    %c0_i32_0 = arith.constant 0 : i32
    return %arg0, %c0_i32 : i32, i32
  }
  func.func @transform_4(%arg0: i32) -> (i32, i32) {
    %c0_i32 = arith.constant 0 : i32
    %c0_i32_0 = arith.constant 0 : i32
    return %arg0, %c0_i32 : i32, i32
  }
}

module attributes {stable_mosaic.version = 11 : i64} {
  func.func @_bn_leaky_kernel(%arg0: i32, %arg1: memref<16x128xbf16, #tpu.memory_space<vmem>>, %arg2: memref<1x128xf32, #tpu.memory_space<vmem>>, %arg3: memref<1x128xf32, #tpu.memory_space<vmem>>, %arg4: memref<16x128xbf16, #tpu.memory_space<vmem>>) attributes {dimension_semantics = [#tpu.dimension_semantics<parallel>], iteration_bounds = array<i64: 1>, scalar_prefetch = 0 : i64, scratch_operands = 0 : i64, tpu.core_type = #tpu.core_type<tc>, window_params = [{transform_indices = @transform_0, window_bounds = array<i64: 16, 128>}, {pipeline_mode = #tpu.pipeline_mode<synchronous>, transform_indices = @transform_1, window_bounds = array<i64: 1, 128>}, {pipeline_mode = #tpu.pipeline_mode<synchronous>, transform_indices = @transform_2, window_bounds = array<i64: 1, 128>}, {transform_indices = @transform_3, window_bounds = array<i64: 16, 128>}]} {
    %c0 = arith.constant 0 : index
    %c0_0 = arith.constant 0 : index
    %0 = vector.load %arg1[%c0, %c0_0] : memref<16x128xbf16, #tpu.memory_space<vmem>>, vector<16x128xbf16>
    %1 = arith.extf %0 : vector<16x128xbf16> to vector<16x128xf32>
    %c0_1 = arith.constant 0 : index
    %c0_2 = arith.constant 0 : index
    %2 = vector.load %arg2[%c0_1, %c0_2] : memref<1x128xf32, #tpu.memory_space<vmem>>, vector<1x128xf32>
    %3 = vector.broadcast %2 : vector<1x128xf32> to vector<16x128xf32>
    %4 = arith.mulf %1, %3 : vector<16x128xf32>
    %c0_3 = arith.constant 0 : index
    %c0_4 = arith.constant 0 : index
    %5 = vector.load %arg3[%c0_3, %c0_4] : memref<1x128xf32, #tpu.memory_space<vmem>>, vector<1x128xf32>
    %6 = vector.broadcast %5 : vector<1x128xf32> to vector<16x128xf32>
    %7 = arith.addf %4, %6 : vector<16x128xf32>
    %cst = arith.constant 0.000000e+00 : f32
    %8 = vector.broadcast %cst : f32 to vector<16x128xf32>
    %9 = arith.cmpf ogt, %7, %8 : vector<16x128xf32>
    %cst_5 = arith.constant 2.000000e-01 : f32
    %10 = vector.broadcast %cst_5 : f32 to vector<16x128xf32>
    %11 = arith.mulf %10, %7 : vector<16x128xf32>
    %12 = arith.select %9, %7, %11 : vector<16x128xi1>, vector<16x128xf32>
    %13 = arith.truncf %12 : vector<16x128xf32> to vector<16x128xbf16>
    %c0_6 = arith.constant 0 : index
    %c0_7 = arith.constant 0 : index
    %14 = vector.load %arg4[%c0_6, %c0_7] : memref<16x128xbf16, #tpu.memory_space<vmem>>, vector<16x128xbf16>
    tpu.vector_store %arg4[%c0_6, %c0_7], %13 {strides = array<i32>} : memref<16x128xbf16, #tpu.memory_space<vmem>>, vector<16x128xbf16>,
    return
  }
  func.func @transform_0(%arg0: i32) -> (i32, i32) {
    %c0_i32 = arith.constant 0 : i32
    %c0_i32_0 = arith.constant 0 : i32
    return %arg0, %c0_i32 : i32, i32
  }
  func.func @transform_1(%arg0: i32) -> (i32, i32) {
    %c0_i32 = arith.constant 0 : i32
    %c0_i32_0 = arith.constant 0 : i32
    %c0_i32_1 = arith.constant 0 : i32
    return %c0_i32, %c0_i32_0 : i32, i32
  }
  func.func @transform_2(%arg0: i32) -> (i32, i32) {
    %c0_i32 = arith.constant 0 : i32
    %c0_i32_0 = arith.constant 0 : i32
    %c0_i32_1 = arith.constant 0 : i32
    return %c0_i32, %c0_i32_0 : i32, i32
  }
  func.func @transform_3(%arg0: i32) -> (i32, i32) {
    %c0_i32 = arith.constant 0 : i32
    %c0_i32_0 = arith.constant 0 : i32
    return %arg0, %c0_i32 : i32, i32
  }
}

module attributes {stable_mosaic.version = 11 : i64} {
  func.func @_head_kernel(%arg0: i32, %arg1: memref<1x1x1024xbf16, #tpu.memory_space<vmem>>, %arg2: memref<1x1024xf32, #tpu.memory_space<vmem>>, %arg3: memref<2x1xf32, #tpu.memory_space<vmem>>) attributes {dimension_semantics = [#tpu.dimension_semantics<arbitrary>], iteration_bounds = array<i64: 2>, scalar_prefetch = 0 : i64, scratch_operands = 0 : i64, tpu.core_type = #tpu.core_type<tc>, window_params = [{transform_indices = @transform_0, window_bounds = array<i64: 1, 1, 1024>}, {pipeline_mode = #tpu.pipeline_mode<synchronous>, transform_indices = @transform_1, window_bounds = array<i64: 1, 1024>}, {pipeline_mode = #tpu.pipeline_mode<synchronous>, transform_indices = @transform_2, window_bounds = array<i64: 2, 1>}]} {
    %c0 = arith.constant 0 : index
    %c0_0 = arith.constant 0 : index
    %c0_1 = arith.constant 0 : index
    %0 = vector.load %arg1[%c0, %c0_0, %c0_1] : memref<1x1x1024xbf16, #tpu.memory_space<vmem>>, vector<1x1x1024xbf16>
    %1 = vector.shape_cast %0 : vector<1x1x1024xbf16> to vector<1x1024xbf16>
    %2 = arith.extf %1 : vector<1x1024xbf16> to vector<1x1024xf32>
    %cst = arith.constant dense<0.000000e+00> : vector<1024xf32>
    %3 = vector.multi_reduction <add>, %2, %cst [0] : vector<1x1024xf32> to vector<1024xf32>
    %4 = vector.shape_cast %3 : vector<1024xf32> to vector<1x1024xf32>
    %cst_2 = arith.constant 1.000000e+00 : f32
    %5 = vector.broadcast %cst_2 : f32 to vector<1x1024xf32>
    %6 = arith.divf %4, %5 : vector<1x1024xf32>
    %c0_3 = arith.constant 0 : index
    %c0_4 = arith.constant 0 : index
    %7 = vector.load %arg2[%c0_3, %c0_4] : memref<1x1024xf32, #tpu.memory_space<vmem>>, vector<1x1024xf32>
    %8 = arith.mulf %6, %7 : vector<1x1024xf32>
    %cst_5 = arith.constant dense<0.000000e+00> : vector<1xf32>
    %9 = vector.multi_reduction <add>, %8, %cst_5 [1] : vector<1x1024xf32> to vector<1xf32>
    %10 = vector.shape_cast %9 : vector<1xf32> to vector<1x1xf32>
    %cst_6 = arith.constant 0.000000e+00 : f32
    %11 = vector.broadcast %cst_6 : f32 to vector<1x1xf32>
    %12 = arith.cmpf ogt, %10, %11 : vector<1x1xf32>
    %cst_7 = arith.constant 2.000000e-01 : f32
    %13 = vector.broadcast %cst_7 : f32 to vector<1x1xf32>
    %14 = arith.mulf %13, %10 : vector<1x1xf32>
    %15 = arith.select %12, %10, %14 : vector<1x1xi1>, vector<1x1xf32>
    %cst_8 = arith.constant 0.000000e+00 : f32
    %16 = vector.broadcast %cst_8 : f32 to vector<1x1xf32>
    %17 = arith.subf %16, %15 : vector<1x1xf32>
    %18 = math.exp %17 : vector<1x1xf32>
    %cst_9 = arith.constant 1.000000e+00 : f32
    %19 = vector.broadcast %cst_9 : f32 to vector<1x1xf32>
    %20 = arith.addf %19, %18 : vector<1x1xf32>
    %cst_10 = arith.constant 1.000000e+00 : f32
    %21 = vector.broadcast %cst_10 : f32 to vector<1x1xf32>
    %22 = arith.divf %21, %20 : vector<1x1xf32>
    %23 = arith.index_cast %arg0 : i32 to index
    %c0_11 = arith.constant 0 : index
    %24 = vector.load %arg3[%23, %c0_11] : memref<2x1xf32, #tpu.memory_space<vmem>>, vector<1x1xf32>
    tpu.vector_store %arg3[%23, %c0_11], %22 {strides = array<i32>} : memref<2x1xf32, #tpu.memory_space<vmem>>, vector<1x1xf32>,
    return
  }
  func.func @transform_0(%arg0: i32) -> (i32, i32, i32) {
    %c0_i32 = arith.constant 0 : i32
    %c0_i32_0 = arith.constant 0 : i32
    %c0_i32_1 = arith.constant 0 : i32
    return %arg0, %c0_i32, %c0_i32_0 : i32, i32, i32
  }
  func.func @transform_1(%arg0: i32) -> (i32, i32) {
    %c0_i32 = arith.constant 0 : i32
    %c0_i32_0 = arith.constant 0 : i32
    %c0_i32_1 = arith.constant 0 : i32
    return %c0_i32, %c0_i32_0 : i32, i32
  }
  func.func @transform_2(%arg0: i32) -> (i32, i32) {
    %c0_i32 = arith.constant 0 : i32
    %c0_i32_0 = arith.constant 0 : i32
    %c0_i32_1 = arith.constant 0 : i32
    return %c0_i32, %c0_i32_0 : i32, i32
  }
}

</mosaic_0001>

<bundles_post_ra>
// kernel: discriminator_forward.6
= control target key start
LH: loop header
LB: loop body
LE: loop exit
PB: predicated region body
PF: predicated region fallthrough
CT: control target
= control target key end

     0   :  { %s1005_s1 = inlined_call_operand.vmem [shape: bf16[512,128], index: 1, kind: input, shape index: {}]   ;;  %s1006_s0 = inlined_call_operand.vmem [shape: bf16[64,512], index: 0, kind: input, shape index: {}]   ;;  %s1007_s2 = inlined_call_operand.vmem [shape: bf16[64,128], index: 2, kind: output, shape index: {}]  }
   0x1   :  { %v738_v0 = vld [vmem:[%s1005_s1 + $0x38] sm:$0xff]  ;;  %v737_v4 = vld [vmem:[%s1005_s1 + $0x30] sm:$0xff]  ;;  %v736_v8 = vld [vmem:[%s1005_s1 + $0x28] sm:$0xff] }
   0x2   :  { %v746_v1 = vld [vmem:[%s1005_s1 + $0x78] sm:$0xff]  ;;  %363 = vmatpush.bf16.msra.mxu0 %v738_v0  ;;  %v745_v5 = vld [vmem:[%s1005_s1 + $0x70] sm:$0xff]  ;;  %v744_v9 = vld [vmem:[%s1005_s1 + $0x68] sm:$0xff] }
   0x3   :  { %v754_v2 = vld [vmem:[%s1005_s1 + $0xb8] sm:$0xff]  ;;  %392 = vmatpush.bf16.msra.mxu1 %v746_v1  ;;  %v753_v6 = vld [vmem:[%s1005_s1 + $0xb0] sm:$0xff]  ;;  %v752_v10 = vld [vmem:[%s1005_s1 + $0xa8] sm:$0xff] }
   0x4   :  { %v762_v3 = vld [vmem:[%s1005_s1 + $0xf8] sm:$0xff]  ;;  %421 = vmatpush.bf16.msra.mxu2 %v754_v2  ;;  %v761_v7 = vld [vmem:[%s1005_s1 + $0xf0] sm:$0xff]  ;;  %v760_v11 = vld [vmem:[%s1005_s1 + $0xe8] sm:$0xff] }
   0x5   :  { %450 = vmatpush.bf16.msra.mxu3 %v762_v3  ;;  %v735_v12 = vld [vmem:[%s1005_s1 + $0x20] sm:$0xff]  ;;  %v734_v16 = vld [vmem:[%s1005_s1 + $0x18] sm:$0xff]  ;;  %v733_v20 = vld [vmem:[%s1005_s1 + $0x10] sm:$0xff] }
   0x6   :  { %364 = vmatpush.bf16.msra.mxu0 %v737_v4  ;;  %v743_v13 = vld [vmem:[%s1005_s1 + $0x60] sm:$0xff]  ;;  %v742_v17 = vld [vmem:[%s1005_s1 + $0x58] sm:$0xff]  ;;  %v741_v21 = vld [vmem:[%s1005_s1 + $0x50] sm:$0xff] }
   0x7   :  { %393 = vmatpush.bf16.msra.mxu1 %v745_v5  ;;  %v751_v14 = vld [vmem:[%s1005_s1 + $0xa0] sm:$0xff]  ;;  %v750_v18 = vld [vmem:[%s1005_s1 + $0x98] sm:$0xff]  ;;  %v749_v22 = vld [vmem:[%s1005_s1 + $0x90] sm:$0xff] }
   0x8   :  { %422 = vmatpush.bf16.msra.mxu2 %v753_v6  ;;  %v759_v15 = vld [vmem:[%s1005_s1 + $0xe0] sm:$0xff]  ;;  %v758_v19 = vld [vmem:[%s1005_s1 + $0xd8] sm:$0xff]  ;;  %v757_v23 = vld [vmem:[%s1005_s1 + $0xd0] sm:$0xff] }
   0x9   :  { %451 = vmatpush.bf16.msra.mxu3 %v761_v7  ;;  %v732_v24 = vld [vmem:[%s1005_s1 + $0x8] sm:$0xff]  ;;  %v731_v28 = vld [vmem:[%s1005_s1] sm:$0xff]  ;;  %v717_v33 = vld [vmem:[%s1006_s0 + $0xc] sm:$0xf0] }
   0xa   :  { %365 = vmatpush.bf16.msra.mxu0 %v736_v8  ;;  %v740_v25 = vld [vmem:[%s1005_s1 + $0x48] sm:$0xff]  ;;  %v739_v29 = vld [vmem:[%s1005_s1 + $0x40] sm:$0xff]  ;;  %v527_v35 = vld [vmem:[%s1006_s0 + $0x10] sm:$0xf0] }
   0xb   :  { %394 = vmatpush.bf16.msra.mxu1 %v744_v9  ;;  %v748_v26 = vld [vmem:[%s1005_s1 + $0x88] sm:$0xff]  ;;  %v747_v30 = vld [vmem:[%s1005_s1 + $0x80] sm:$0xff]  ;;  %v718_v37 = vld [vmem:[%s1006_s0 + $0x14] sm:$0xf0] }
   0xc   :  { %423 = vmatpush.bf16.msra.mxu2 %v752_v10  ;;  %v756_v27 = vld [vmem:[%s1005_s1 + $0xc8] sm:$0xff]  ;;  %v755_v31 = vld [vmem:[%s1005_s1 + $0xc0] sm:$0xff]  ;;  %v535_v39 = vld [vmem:[%s1006_s0 + $0x18] sm:$0xf0] }
   0xd   :  { %452 = vmatpush.bf16.msra.mxu3 %v760_v11  ;;  %v525_v32 = vld [vmem:[%s1006_s0] sm:$0xf]  ;;  %v715_v34 = vld [vmem:[%s1006_s0 + $0x4] sm:$0xf]  ;;  %v533_v36 = vld [vmem:[%s1006_s0 + $0x8] sm:$0xf] }
   0xe   :  { %366 = vmatpush.bf16.msra.mxu0 %v735_v12  ;;  %v716_v38 = vld [vmem:[%s1006_s0 + $0xc] sm:$0xf]  ;;  %v526_v40 = vor.u32 %v717_v33, %v525_v32  ;;  %v530_v41 = vor.u32 %v715_v34, %v527_v35  ;;  %v534_v42 = vor.u32 %v718_v37, %v533_v36  ;;  %v541_v44 = vld [vmem:[%s1006_s0 + $0x20] sm:$0xf]  ;;  %v721_v45 = vld [vmem:[%s1006_s0 + $0x2c] sm:$0xf0] }
   0xf   :  { %395 = vmatpush.bf16.msra.mxu1 %v743_v13  ;;  %v538_v43 = vor.u32 %v716_v38, %v535_v39  ;;  %v719_v46 = vld [vmem:[%s1006_s0 + $0x24] sm:$0xf]  ;;  %v543_v47 = vld [vmem:[%s1006_s0 + $0x30] sm:$0xf0]  ;;  %v549_v48 = vld [vmem:[%s1006_s0 + $0x28] sm:$0xf]  ;;  %v542_v52 = vor.u32 %v721_v45, %v541_v44 }
  0x10   :  { %424 = vmatpush.bf16.msra.mxu2 %v751_v14  ;;  %v722_v49 = vld [vmem:[%s1006_s0 + $0x34] sm:$0xf0]  ;;  %v720_v50 = vld [vmem:[%s1006_s0 + $0x2c] sm:$0xf]  ;;  %v551_v51 = vld [vmem:[%s1006_s0 + $0x38] sm:$0xf0]  ;;  %v546_v53 = vor.u32 %v719_v46, %v543_v47 }
  0x11   :  { %453 = vmatpush.bf16.msra.mxu3 %v759_v15  ;;  %v550_v54 = vor.u32 %v722_v49, %v549_v48  ;;  %v554_v55 = vor.u32 %v720_v50, %v551_v51  ;;  %v557_v56 = vld [vmem:[%s1006_s0 + $0x40] sm:$0xf]  ;;  %v725_v57 = vld [vmem:[%s1006_s0 + $0x4c] sm:$0xf0]  ;;  %v723_v58 = vld [vmem:[%s1006_s0 + $0x44] sm:$0xf] }
  0x12   :  { %367 = vmatpush.bf16.msra.mxu0 %v734_v16  ;;  %v559_v59 = vld [vmem:[%s1006_s0 + $0x50] sm:$0xf0]  ;;  %v565_v60 = vld [vmem:[%s1006_s0 + $0x48] sm:$0xf]  ;;  %v726_v61 = vld [vmem:[%s1006_s0 + $0x54] sm:$0xf0]  ;;  %v558_v0 = vor.u32 %v725_v57, %v557_v56 }
  0x13   :  { %396 = vmatpush.bf16.msra.mxu1 %v742_v17  ;;  %v724_v62 = vld [vmem:[%s1006_s0 + $0x4c] sm:$0xf]  ;;  %v567_v63 = vld [vmem:[%s1006_s0 + $0x58] sm:$0xf0]  ;;  %v562_v1 = vor.u32 %v723_v58, %v559_v59  ;;  %v566_v2 = vor.u32 %v726_v61, %v565_v60  ;;  %v573_v4 = vld [vmem:[%s1006_s0 + $0x60] sm:$0xf] }
  0x14   :  { %425 = vmatpush.bf16.msra.mxu2 %v750_v18  ;;  %v570_v3 = vor.u32 %v724_v62, %v567_v63  ;;  %v729_v5 = vld [vmem:[%s1006_s0 + $0x6c] sm:$0xf0]  ;;  %v727_v6 = vld [vmem:[%s1006_s0 + $0x64] sm:$0xf]  ;;  %v575_v7 = vld [vmem:[%s1006_s0 + $0x70] sm:$0xf0] }
  0x15   :  { %454 = vmatpush.bf16.msra.mxu3 %v758_v19  ;;  %v581_v8 = vld [vmem:[%s1006_s0 + $0x68] sm:$0xf]  ;;  %v730_v9 = vld [vmem:[%s1006_s0 + $0x74] sm:$0xf0]  ;;  %v728_v10 = vld [vmem:[%s1006_s0 + $0x6c] sm:$0xf]  ;;  %v574_v12 = vor.u32 %v729_v5, %v573_v4  ;;  %v578_v13 = vor.u32 %v727_v6, %v575_v7 }
  0x16   :  { %368 = vmatpush.bf16.msra.mxu0 %v733_v20  ;;  %v583_v11 = vld [vmem:[%s1006_s0 + $0x78] sm:$0xf0]  ;;  %v582_v14 = vor.u32 %v730_v9, %v581_v8 }
  0x17   :  { %397 = vmatpush.bf16.msra.mxu1 %v741_v21  ;;  %v586_v15 = vor.u32 %v728_v10, %v583_v11 }
  0x18   :  { %426 = vmatpush.bf16.msra.mxu2 %v749_v22 }
  0x19   :  { %455 = vmatpush.bf16.msra.mxu3 %v757_v23 }
  0x1a   :  { %369 = vmatpush.bf16.msra.mxu0 %v732_v24 }
  0x1b   :  { %398 = vmatpush.bf16.msra.mxu1 %v740_v25 }
  0x1c   :  { %427 = vmatpush.bf16.msra.mxu2 %v748_v26 }
  0x1d   :  { %456 = vmatpush.bf16.msra.mxu3 %v756_v27 }
  0x1e   :  { %370 = vmatpush.bf16.msra.mxu0 %v731_v28 }
  0x1f   :  { %399 = vmatpush.bf16.msra.mxu1 %v739_v29 }
  0x20   :  { %428 = vmatpush.bf16.msra.mxu2 %v747_v30 }
  0x21   :  { %457 = vmatpush.bf16.msra.mxu3 %v755_v31  ;;  %371 = vmatmul.bf16.vlgmr.msra.gmra.mxu0 %v526_v40 }
  0x22   :  { %400 = vmatmul.bf16.vlgmr.msra.gmra.mxu1 %v530_v41 }
  0x23   :  { %429 = vmatmul.bf16.vlgmr.msra.gmra.mxu2 %v534_v42 }
  0x24   :  { %458 = vmatmul.bf16.vlgmr.msra.gmra.mxu3 %v538_v43 }
  0x31   :  { %376 = vmatmul.bf16.gmra.mxu0 %v542_v52 }
  0x32   :  { %405 = vmatmul.bf16.gmra.mxu1 %v546_v53 }
  0x33   :  { %434 = vmatmul.bf16.gmra.mxu2 %v550_v54 }
  0x34   :  { %463 = vmatmul.bf16.gmra.mxu3 %v554_v55 }
  0x41   :  { %381 = vmatmul.bf16.gmra.mxu0 %v558_v0 }
  0x42   :  { %410 = vmatmul.bf16.gmra.mxu1 %v562_v1 }
  0x43   :  { %439 = vmatmul.bf16.gmra.mxu2 %v566_v2 }
  0x44   :  { %468 = vmatmul.bf16.gmra.mxu3 %v570_v3 }
  0x51   :  { %386 = vmatmul.bf16.gmra.mxu0 %v574_v12 }
  0x52   :  { %415 = vmatmul.bf16.gmra.mxu1 %v578_v13 }
  0x53   :  { %444 = vmatmul.bf16.gmra.mxu2 %v582_v14 }
  0x54   :  { %473 = vmatmul.bf16.gmra.mxu3 %v586_v15 }
  0x9e   :  { %v372_v16 = vpop.f32.mrf.mxu0 }
  0x9f   :  { %v401_v17 = vpop.f32.mrf.mxu1 }
  0xa0   :  { %v402_v18 = vadd.f32 %v401_v17, %v372_v16 }
  0xa6   :  { %v430_v19 = vpop.f32.mrf.mxu2  ;;  %v374_v21 = vpop.f32.mrf.mxu0 }
  0xa7   :  { %v459_v20 = vpop.f32.mrf.mxu3  ;;  %v403_v22 = vpop.f32.mrf.mxu1  ;;  %v431_v23 = vadd.f32 %v430_v19, %v402_v18 }
  0xa8   :  { %v404_v25 = vadd.f32 %v403_v22, %v374_v21 }
  0xa9   :  { %v460_v24 = vadd.f32 %v459_v20, %v431_v23 }
  0xab   :  { %v487_v31 = vmul.f32 0.2, %v460_v24  ;;  %vm479_vm0 = vcmp.gt.f32.partialorder %v460_v24, 0.0 }
  0xad   :  { %v495_v34 = vsel %vm479_vm0, %v460_v24, %v487_v31 }
  0xae   :  { %v432_v26 = vpop.f32.mrf.mxu2  ;;  %v377_v29 = vpop.f32.mrf.mxu0 }
  0xaf   :  { %v461_v27 = vpop.f32.mrf.mxu3  ;;  %v433_v28 = vadd.f32 %v432_v26, %v404_v25  ;;  %v406_v30 = vpop.f32.mrf.mxu1 }
  0xb0   :  { %v407_v36 = vadd.f32 %v406_v30, %v377_v29 }
  0xb1   :  { %v462_v32 = vadd.f32 %v461_v27, %v433_v28 }
  0xb3   :  { %vm480_vm1 = vcmp.gt.f32.partialorder %v462_v32, 0.0  ;;  %v488_v33 = vmul.f32 0.2, %v462_v32 }
  0xb5   :  { %v496_v35 = vsel %vm480_vm1, %v462_v32, %v488_v33 }
  0xb6   :  { %v766_v37 = vpack.c.bf16 %v496_v35, %v495_v34  ;;  %v435_v38 = vpop.f32.mrf.mxu2  ;;  %v379_v40 = vpop.f32.mrf.mxu0 }
  0xb7   :  { %v464_v39 = vpop.f32.mrf.mxu3  ;;  %v408_v41 = vpop.f32.mrf.mxu1  ;;  %v436_v42 = vadd.f32 %v435_v38, %v407_v36 }
  0xb8   :  { %767 = vst [vmem:[%s1007_s2] sm:$0xff] %v766_v37   ;;  %v409_v44 = vadd.f32 %v408_v41, %v379_v40 }
  0xb9   :  { %v465_v43 = vadd.f32 %v464_v39, %v436_v42 }
  0xbb   :  { %v489_v50 = vmul.f32 0.2, %v465_v43  ;;  %vm481_vm2 = vcmp.gt.f32.partialorder %v465_v43, 0.0 }
  0xbd   :  { %v497_v53 = vsel %vm481_vm2, %v465_v43, %v489_v50 }
  0xbe   :  { %v437_v45 = vpop.f32.mrf.mxu2  ;;  %v382_v48 = vpop.f32.mrf.mxu0 }
  0xbf   :  { %v466_v46 = vpop.f32.mrf.mxu3  ;;  %v438_v47 = vadd.f32 %v437_v45, %v409_v44  ;;  %v411_v49 = vpop.f32.mrf.mxu1 }
  0xc0   :  { %v412_v55 = vadd.f32 %v411_v49, %v382_v48 }
  0xc1   :  { %v467_v51 = vadd.f32 %v466_v46, %v438_v47 }
  0xc3   :  { %vm482_vm3 = vcmp.gt.f32.partialorder %v467_v51, 0.0  ;;  %v490_v52 = vmul.f32 0.2, %v467_v51 }
  0xc5   :  { %v498_v54 = vsel %vm482_vm3, %v467_v51, %v490_v52 }
  0xc6   :  { %v771_v56 = vpack.c.bf16 %v498_v54, %v497_v53  ;;  %v440_v57 = vpop.f32.mrf.mxu2  ;;  %v384_v59 = vpop.f32.mrf.mxu0 }
  0xc7   :  { %v469_v58 = vpop.f32.mrf.mxu3  ;;  %v413_v60 = vpop.f32.mrf.mxu1  ;;  %v441_v61 = vadd.f32 %v440_v57, %v412_v55 }
  0xc8   :  { %783 = vst [vmem:[%s1007_s2 + $0x8] sm:$0xff] %v771_v56   ;;  %v414_v63 = vadd.f32 %v413_v60, %v384_v59 }
  0xc9   :  { %v470_v62 = vadd.f32 %v469_v58, %v441_v61 }
  0xcb   :  { %v491_v5 = vmul.f32 0.2, %v470_v62  ;;  %vm483_vm4 = vcmp.gt.f32.partialorder %v470_v62, 0.0 }
  0xcd   :  { %v499_v8 = vsel %vm483_vm4, %v470_v62, %v491_v5 }
  0xce   :  { %v442_v0 = vpop.f32.mrf.mxu2  ;;  %v387_v3 = vpop.f32.mrf.mxu0 }
  0xcf   :  { %v471_v1 = vpop.f32.mrf.mxu3  ;;  %v443_v2 = vadd.f32 %v442_v0, %v414_v63  ;;  %v416_v4 = vpop.f32.mrf.mxu1 }
  0xd0   :  { %v417_v10 = vadd.f32 %v416_v4, %v387_v3 }
  0xd1   :  { %v472_v6 = vadd.f32 %v471_v1, %v443_v2 }
  0xd3   :  { %vm484_vm5 = vcmp.gt.f32.partialorder %v472_v6, 0.0  ;;  %v492_v7 = vmul.f32 0.2, %v472_v6 }
  0xd5   :  { %v500_v9 = vsel %vm484_vm5, %v472_v6, %v492_v7 }
  0xd6   :  { %v776_v11 = vpack.c.bf16 %v500_v9, %v499_v8  ;;  %v445_v12 = vpop.f32.mrf.mxu2  ;;  %v389_v15 = vpop.f32.mrf.mxu0 }
  0xd7   :  { %v474_v13 = vpop.f32.mrf.mxu3  ;;  %v446_v14 = vadd.f32 %v445_v12, %v417_v10  ;;  %v418_v16 = vpop.f32.mrf.mxu1 }
  0xd8   :  { %784 = vst [vmem:[%s1007_s2 + $0x10] sm:$0xff] %v776_v11   ;;  %v419_v18 = vadd.f32 %v418_v16, %v389_v15 }
  0xd9   :  { %v475_v17 = vadd.f32 %v474_v13, %v446_v14 }
  0xdb   :  { %v493_v22 = vmul.f32 0.2, %v475_v17  ;;  %vm485_vm6 = vcmp.gt.f32.partialorder %v475_v17, 0.0 }
  0xdd   :  { %v501_v25 = vsel %vm485_vm6, %v475_v17, %v493_v22 }
  0xde   :  { %v447_v19 = vpop.f32.mrf.mxu2 }
  0xdf   :  { %v448_v20 = vadd.f32 %v447_v19, %v419_v18  ;;  %v476_v21 = vpop.f32.mrf.mxu3 }
  0xe1   :  { %v477_v23 = vadd.f32 %v476_v21, %v448_v20 }
  0xe3   :  { %vm486_vm7 = vcmp.gt.f32.partialorder %v477_v23, 0.0  ;;  %v494_v24 = vmul.f32 0.2, %v477_v23 }
  0xe5   :  { %v502_v26 = vsel %vm486_vm7, %v477_v23, %v494_v24 }
  0xe6   :  { %v781_v27 = vpack.c.bf16 %v502_v26, %v501_v25 }
  0xe8   :  { %785 = vst [vmem:[%s1007_s2 + $0x18] sm:$0xff] %v781_v27  }

// kernel: tile.23
= control target key start
LH: loop header
LB: loop body
LE: loop exit
PB: predicated region body
PF: predicated region fallthrough
CT: control target
= control target key end

     0   :  { %s22_s0 = inlined_call_operand.vmem [shape: f32[32], index: 0, kind: input, shape index: {}]   ;;  %s23_s1 = inlined_call_operand.vmem [shape: f32[4,32], index: 1, kind: output, shape index: {}]  }
   0x1   :  { %v4_v0 = vld [vmem:[%s22_s0] ss:$0 sm:$0xff] }
   0x2   :  { %5 = vst [vmem:[%s23_s1] sm:$0xf] %v4_v0 }

// kernel: tile.24
= control target key start
LH: loop header
LB: loop body
LE: loop exit
PB: predicated region body
PF: predicated region fallthrough
CT: control target
= control target key end

     0   :  { %s37_s8 = smov 32   ;;  %s38_s9 = smov 64   ;;  %vm7_vm0 = vcmask 261120   ;;  %vm13_vm1 = vcmask 1048320   ;;  %vm19_vm2 = vcmask 785920   ;;  %vm25_vm3 = vcmask 523520   ;;  %s55_s0 = inlined_call_operand.vmem [shape: f32[4,32], index: 0, kind: input, shape index: {}]   ;;  %s56_s1 = inlined_call_operand.vmem [shape: f32[1,128], index: 1, kind: output, shape index: {}]  }
   0x1   :  { %v4_v0 = vld [vmem:[%s55_s0] sm:$0xf]  ;;  %s36_s0 = smov 96  }
   0x2   :  { %5 = vst [vmem:[#allocation1] sm:$0xf] %v4_v0 }
   0x9   :  { %v10_v1 = vld [vmem:[#allocation1 + $0x3] sm:$0x1]   ;;  %v22_v2 = vld [vmem:[#allocation1 + $0x1] sm:$0x1]   ;;  %v16_v3 = vld [vmem:[#allocation1 + $0x2] sm:$0x1]  }
   0xa   :  { %11 = vrot.lane.b32.xlu0 %v10_v1, %s36_s0  ;;  %23 = vrot.lane.b32.xlu1 %v22_v2, %s37_s8  ;;  %v6_v4 = vld [vmem:[#allocation1] sm:$0x1]  }
   0xb   :  { %8 = vst.msk [vmem:[#allocation0] sm:$0x1] %vm7_vm0, %v6_v4  }
  0x12   :  { %17 = vrot.lane.b32.xlu0 %v16_v3, %s38_s9 }
  0x7c   :  { %v12_v5 = vpop.permute.xlu0 %11   ;;  %v24_v6 = vpop.permute.xlu1 %23  }
  0x7d   :  { %14 = vst.msk [vmem:[#allocation0] sm:$0x1] %vm13_vm1, %v12_v5  }
  0x84   :  { %v18_v7 = vpop.permute.xlu0 %17  }
  0x85   :  { %20 = vst.msk [vmem:[#allocation0] sm:$0x1] %vm19_vm2, %v18_v7  }
  0x86   :  { %26 = vst.msk [vmem:[#allocation0] sm:$0x1] %vm25_vm3, %v24_v6  }
  0x8d   :  { %v29_v8 = vld [vmem:[#allocation0] sm:$0x1] }
  0x8e   :  { %32 = vst [vmem:[%s56_s1] sm:$0x1] %v29_v8 }

// kernel: discriminator_forward.7
= control target key start
LH: loop header
LB: loop body
LE: loop exit
PB: predicated region body
PF: predicated region fallthrough
CT: control target
= control target key end

     0   :  { %s1554_s1 = inlined_call_operand.vmem [shape: bf16[1024,128], index: 1, kind: input, shape index: {}]   ;;  %s1555_s0 = inlined_call_operand.vmem [shape: bf16[32,1024], index: 0, kind: input, shape index: {}]   ;;  %s1556_s2 = inlined_call_operand.vmem [shape: bf16[32,128], index: 2, kind: output, shape index: {0}]   ;;  %s1557_s3 = inlined_call_operand.vmem [shape: f32[8,128], index: 3, kind: output, shape index: {1}]   ;;  %s1558_s4 = inlined_call_operand.vmem [shape: f32[8,128], index: 4, kind: output, shape index: {2}]  }
   0x1   :  { %v1161_v0 = vld [vmem:[%s1554_s1 + $0x38] sm:$0xff]  ;;  %v1160_v4 = vld [vmem:[%s1554_s1 + $0x30] sm:$0xff]  ;;  %v1159_v8 = vld [vmem:[%s1554_s1 + $0x28] sm:$0xff] }
   0x2   :  { %v1169_v1 = vld [vmem:[%s1554_s1 + $0x78] sm:$0xff]  ;;  %622 = vmatpush.bf16.msra.mxu0 %v1161_v0  ;;  %v1168_v5 = vld [vmem:[%s1554_s1 + $0x70] sm:$0xff]  ;;  %v1167_v9 = vld [vmem:[%s1554_s1 + $0x68] sm:$0xff] }
   0x3   :  { %v1177_v2 = vld [vmem:[%s1554_s1 + $0xb8] sm:$0xff]  ;;  %641 = vmatpush.bf16.msra.mxu1 %v1169_v1  ;;  %v1176_v6 = vld [vmem:[%s1554_s1 + $0xb0] sm:$0xff]  ;;  %v1175_v10 = vld [vmem:[%s1554_s1 + $0xa8] sm:$0xff] }
   0x4   :  { %v1185_v3 = vld [vmem:[%s1554_s1 + $0xf8] sm:$0xff]  ;;  %660 = vmatpush.bf16.msra.mxu2 %v1177_v2  ;;  %v1184_v7 = vld [vmem:[%s1554_s1 + $0xf0] sm:$0xff]  ;;  %v1183_v11 = vld [vmem:[%s1554_s1 + $0xe8] sm:$0xff] }
   0x5   :  { %679 = vmatpush.bf16.msra.mxu3 %v1185_v3  ;;  %v1158_v12 = vld [vmem:[%s1554_s1 + $0x20] sm:$0xff]  ;;  %v1157_v16 = vld [vmem:[%s1554_s1 + $0x18] sm:$0xff]  ;;  %v1156_v20 = vld [vmem:[%s1554_s1 + $0x10] sm:$0xff] }
   0x6   :  { %623 = vmatpush.bf16.msra.mxu0 %v1160_v4  ;;  %v1166_v13 = vld [vmem:[%s1554_s1 + $0x60] sm:$0xff]  ;;  %v1165_v17 = vld [vmem:[%s1554_s1 + $0x58] sm:$0xff]  ;;  %v1164_v21 = vld [vmem:[%s1554_s1 + $0x50] sm:$0xff] }
   0x7   :  { %642 = vmatpush.bf16.msra.mxu1 %v1168_v5  ;;  %v1174_v14 = vld [vmem:[%s1554_s1 + $0xa0] sm:$0xff]  ;;  %v1173_v18 = vld [vmem:[%s1554_s1 + $0x98] sm:$0xff]  ;;  %v1172_v22 = vld [vmem:[%s1554_s1 + $0x90] sm:$0xff] }
   0x8   :  { %661 = vmatpush.bf16.msra.mxu2 %v1176_v6  ;;  %v1182_v15 = vld [vmem:[%s1554_s1 + $0xe0] sm:$0xff]  ;;  %v1181_v19 = vld [vmem:[%s1554_s1 + $0xd8] sm:$0xff]  ;;  %v1180_v23 = vld [vmem:[%s1554_s1 + $0xd0] sm:$0xff] }
   0x9   :  { %680 = vmatpush.bf16.msra.mxu3 %v1184_v7  ;;  %v1155_v24 = vld [vmem:[%s1554_s1 + $0x8] sm:$0xff]  ;;  %v1154_v28 = vld [vmem:[%s1554_s1] sm:$0xff]  ;;  %v1209_v40 = vld [vmem:[%s1554_s1 + $0x1b8] sm:$0xff] }
   0xa   :  { %624 = vmatpush.bf16.msra.mxu0 %v1159_v8  ;;  %v1163_v25 = vld [vmem:[%s1554_s1 + $0x48] sm:$0xff]  ;;  %v1162_v29 = vld [vmem:[%s1554_s1 + $0x40] sm:$0xff]  ;;  %v1193_v41 = vld [vmem:[%s1554_s1 + $0x138] sm:$0xff] }
   0xb   :  { %643 = vmatpush.bf16.msra.mxu1 %v1167_v9  ;;  %v1171_v26 = vld [vmem:[%s1554_s1 + $0x88] sm:$0xff]  ;;  %v1170_v30 = vld [vmem:[%s1554_s1 + $0x80] sm:$0xff]  ;;  %v1201_v46 = vld [vmem:[%s1554_s1 + $0x178] sm:$0xff] }
   0xc   :  { %662 = vmatpush.bf16.msra.mxu2 %v1175_v10  ;;  %v1179_v27 = vld [vmem:[%s1554_s1 + $0xc8] sm:$0xff]  ;;  %v1178_v31 = vld [vmem:[%s1554_s1 + $0xc0] sm:$0xff]  ;;  %v1217_v47 = vld [vmem:[%s1554_s1 + $0x1f8] sm:$0xff] }
   0xd   :  { %681 = vmatpush.bf16.msra.mxu3 %v1183_v11  ;;  %v820_v32 = vld [vmem:[%s1555_s0] sm:$0xf]  ;;  %v1138_v34 = vld [vmem:[%s1555_s0 + $0x4] sm:$0xf]  ;;  %v828_v36 = vld [vmem:[%s1555_s0 + $0x8] sm:$0xf] }
   0xe   :  { %625 = vmatpush.bf16.msra.mxu0 %v1158_v12  ;;  %v1142_v33 = vld [vmem:[%s1555_s0 + $0x1c] sm:$0xf0]  ;;  %v822_v35 = vld [vmem:[%s1555_s0 + $0x20] sm:$0xf0]  ;;  %v1143_v37 = vld [vmem:[%s1555_s0 + $0x24] sm:$0xf0] }
   0xf   :  { %644 = vmatpush.bf16.msra.mxu1 %v1166_v13  ;;  %v1139_v38 = vld [vmem:[%s1555_s0 + $0xc] sm:$0xf]  ;;  %v821_v42 = vor.u32 %v1142_v33, %v820_v32  ;;  %v825_v43 = vor.u32 %v1138_v34, %v822_v35  ;;  %v829_v44 = vor.u32 %v1143_v37, %v828_v36  ;;  %v1208_v48 = vld [vmem:[%s1554_s1 + $0x1b0] sm:$0xff]  ;;  %v1206_v56 = vld [vmem:[%s1554_s1 + $0x1a0] sm:$0xff] }
  0x10   :  { %663 = vmatpush.bf16.msra.mxu2 %v1174_v14  ;;  %v830_v39 = vld [vmem:[%s1555_s0 + $0x28] sm:$0xf0]  ;;  %v1192_v49 = vld [vmem:[%s1554_s1 + $0x130] sm:$0xff]  ;;  %v1190_v57 = vld [vmem:[%s1554_s1 + $0x120] sm:$0xff] }
  0x11   :  { %682 = vmatpush.bf16.msra.mxu3 %v1182_v15  ;;  %v833_v45 = vor.u32 %v1139_v38, %v830_v39  ;;  %v1200_v50 = vld [vmem:[%s1554_s1 + $0x170] sm:$0xff]  ;;  %v1207_v52 = vld [vmem:[%s1554_s1 + $0x1a8] sm:$0xff]  ;;  %v1198_v58 = vld [vmem:[%s1554_s1 + $0x160] sm:$0xff] }
  0x12   :  { %626 = vmatpush.bf16.msra.mxu0 %v1157_v16  ;;  %v1216_v51 = vld [vmem:[%s1554_s1 + $0x1f0] sm:$0xff]  ;;  %v1191_v53 = vld [vmem:[%s1554_s1 + $0x128] sm:$0xff]  ;;  %v1214_v59 = vld [vmem:[%s1554_s1 + $0x1e0] sm:$0xff] }
  0x13   :  { %645 = vmatpush.bf16.msra.mxu1 %v1165_v17  ;;  %v1199_v54 = vld [vmem:[%s1554_s1 + $0x168] sm:$0xff]  ;;  %v852_v60 = vld [vmem:[%s1555_s0 + $0x40] sm:$0xf]  ;;  %v1146_v62 = vld [vmem:[%s1555_s0 + $0x44] sm:$0xf] }
  0x14   :  { %664 = vmatpush.bf16.msra.mxu2 %v1173_v18  ;;  %v1215_v55 = vld [vmem:[%s1554_s1 + $0x1e8] sm:$0xff]  ;;  %v1150_v61 = vld [vmem:[%s1555_s0 + $0x5c] sm:$0xf0]  ;;  %v854_v63 = vld [vmem:[%s1555_s0 + $0x60] sm:$0xf0] }
  0x15   :  { %683 = vmatpush.bf16.msra.mxu3 %v1181_v19  ;;  %v860_v0 = vld [vmem:[%s1555_s0 + $0x48] sm:$0xf]  ;;  %v1147_v2 = vld [vmem:[%s1555_s0 + $0x4c] sm:$0xf]  ;;  %v1205_v4 = vld [vmem:[%s1554_s1 + $0x198] sm:$0xff]  ;;  %v853_v6 = vor.u32 %v1150_v61, %v852_v60  ;;  %v857_v7 = vor.u32 %v1146_v62, %v854_v63 }
  0x16   :  { %627 = vmatpush.bf16.msra.mxu0 %v1156_v20  ;;  %v1151_v1 = vld [vmem:[%s1555_s0 + $0x64] sm:$0xf0]  ;;  %v862_v3 = vld [vmem:[%s1555_s0 + $0x68] sm:$0xf0]  ;;  %v1189_v5 = vld [vmem:[%s1554_s1 + $0x118] sm:$0xff] }
  0x17   :  { %646 = vmatpush.bf16.msra.mxu1 %v1164_v21  ;;  %v861_v8 = vor.u32 %v1151_v1, %v860_v0  ;;  %v865_v9 = vor.u32 %v1147_v2, %v862_v3  ;;  %v1197_v10 = vld [vmem:[%s1554_s1 + $0x158] sm:$0xff]  ;;  %v1204_v12 = vld [vmem:[%s1554_s1 + $0x190] sm:$0xff]  ;;  %v1203_v16 = vld [vmem:[%s1554_s1 + $0x188] sm:$0xff] }
  0x18   :  { %665 = vmatpush.bf16.msra.mxu2 %v1172_v22  ;;  %v1213_v11 = vld [vmem:[%s1554_s1 + $0x1d8] sm:$0xff]  ;;  %v1188_v13 = vld [vmem:[%s1554_s1 + $0x110] sm:$0xff]  ;;  %v1187_v17 = vld [vmem:[%s1554_s1 + $0x108] sm:$0xff] }
  0x19   :  { %684 = vmatpush.bf16.msra.mxu3 %v1180_v23  ;;  %v1196_v14 = vld [vmem:[%s1554_s1 + $0x150] sm:$0xff]  ;;  %v1195_v18 = vld [vmem:[%s1554_s1 + $0x148] sm:$0xff]  ;;  %v1202_v20 = vld [vmem:[%s1554_s1 + $0x180] sm:$0xff] }
  0x1a   :  { %628 = vmatpush.bf16.msra.mxu0 %v1155_v24  ;;  %v1212_v15 = vld [vmem:[%s1554_s1 + $0x1d0] sm:$0xff]  ;;  %v1211_v19 = vld [vmem:[%s1554_s1 + $0x1c8] sm:$0xff]  ;;  %v1186_v21 = vld [vmem:[%s1554_s1 + $0x100] sm:$0xff] }
  0x1b   :  { %647 = vmatpush.bf16.msra.mxu1 %v1163_v25  ;;  %v1194_v22 = vld [vmem:[%s1554_s1 + $0x140] sm:$0xff]  ;;  %v836_v24 = vld [vmem:[%s1555_s0 + $0x10] sm:$0xf]  ;;  %v1148_v38 = vld [vmem:[%s1555_s0 + $0x54] sm:$0xf] }
  0x1c   :  { %666 = vmatpush.bf16.msra.mxu2 %v1171_v26  ;;  %v1210_v23 = vld [vmem:[%s1554_s1 + $0x1c0] sm:$0xff]  ;;  %v1144_v25 = vld [vmem:[%s1555_s0 + $0x2c] sm:$0xf0]  ;;  %v1140_v26 = vld [vmem:[%s1555_s0 + $0x14] sm:$0xf] }
  0x1d   :  { %685 = vmatpush.bf16.msra.mxu3 %v1179_v27  ;;  %v838_v27 = vld [vmem:[%s1555_s0 + $0x30] sm:$0xf0]  ;;  %v837_v32 = vor.u32 %v1144_v25, %v836_v24  ;;  %v868_v36 = vld [vmem:[%s1555_s0 + $0x50] sm:$0xf] }
  0x1e   :  { %629 = vmatpush.bf16.msra.mxu0 %v1154_v28  ;;  %v844_v28 = vld [vmem:[%s1555_s0 + $0x18] sm:$0xf]  ;;  %v841_v33 = vor.u32 %v1140_v26, %v838_v27  ;;  %v1152_v37 = vld [vmem:[%s1555_s0 + $0x6c] sm:$0xf0]  ;;  %v870_v39 = vld [vmem:[%s1555_s0 + $0x70] sm:$0xf0] }
  0x1f   :  { %648 = vmatpush.bf16.msra.mxu1 %v1162_v29  ;;  %v1145_v29 = vld [vmem:[%s1555_s0 + $0x34] sm:$0xf0] }
  0x20   :  { %667 = vmatpush.bf16.msra.mxu2 %v1170_v30  ;;  %v1141_v30 = vld [vmem:[%s1555_s0 + $0x1c] sm:$0xf]  ;;  %v845_v34 = vor.u32 %v1145_v29, %v844_v28 }
  0x21   :  { %686 = vmatpush.bf16.msra.mxu3 %v1178_v31  ;;  %630 = vmatmul.bf16.vlgmr.msra.gmra.mxu0 %v821_v42  ;;  %v846_v31 = vld [vmem:[%s1555_s0 + $0x38] sm:$0xf0] }
  0x22   :  { %698 = vmatpush.bf16.msrb.mxu0 %v1193_v41  ;;  %649 = vmatmul.bf16.vlgmr.msra.gmra.mxu1 %v825_v43  ;;  %v849_v35 = vor.u32 %v1141_v30, %v846_v31  ;;  %v1153_v41 = vld [vmem:[%s1555_s0 + $0x74] sm:$0xf0]  ;;  %v1149_v42 = vld [vmem:[%s1555_s0 + $0x5c] sm:$0xf] }
  0x23   :  { %668 = vmatmul.bf16.vlgmr.msra.gmra.mxu2 %v829_v44  ;;  %717 = vmatpush.bf16.msrb.mxu1 %v1201_v46  ;;  %v878_v43 = vld [vmem:[%s1555_s0 + $0x78] sm:$0xf0]  ;;  %v869_v44 = vor.u32 %v1152_v37, %v868_v36 }
  0x24   :  { %736 = vmatpush.bf16.msrb.mxu2 %v1209_v40  ;;  %687 = vmatmul.bf16.vlgmr.msra.gmra.mxu3 %v833_v45  ;;  %v876_v40 = vld [vmem:[%s1555_s0 + $0x58] sm:$0xf]  ;;  %v873_v45 = vor.u32 %v1148_v38, %v870_v39 }
  0x25   :  { %755 = vmatpush.bf16.msrb.mxu3 %v1217_v47  ;;  %v877_v46 = vor.u32 %v1153_v41, %v876_v40  ;;  %v881_v47 = vor.u32 %v1149_v42, %v878_v43 }
  0x26   :  { %699 = vmatpush.bf16.msrb.mxu0 %v1192_v49 }
  0x27   :  { %718 = vmatpush.bf16.msrb.mxu1 %v1200_v50 }
  0x28   :  { %737 = vmatpush.bf16.msrb.mxu2 %v1208_v48 }
  0x29   :  { %756 = vmatpush.bf16.msrb.mxu3 %v1216_v51 }
  0x2a   :  { %700 = vmatpush.bf16.msrb.mxu0 %v1191_v53 }
  0x2b   :  { %719 = vmatpush.bf16.msrb.mxu1 %v1199_v54 }
  0x2c   :  { %738 = vmatpush.bf16.msrb.mxu2 %v1207_v52 }
  0x2d   :  { %757 = vmatpush.bf16.msrb.mxu3 %v1215_v55 }
  0x2e   :  { %701 = vmatpush.bf16.msrb.mxu0 %v1190_v57 }
  0x2f   :  { %720 = vmatpush.bf16.msrb.mxu1 %v1198_v58 }
  0x30   :  { %739 = vmatpush.bf16.msrb.mxu2 %v1206_v56 }
  0x31   :  { %758 = vmatpush.bf16.msrb.mxu3 %v1214_v59  ;;  %635 = vmatmul.bf16.gmra.mxu0 %v853_v6 }
  0x32   :  { %702 = vmatpush.bf16.msrb.mxu0 %v1189_v5  ;;  %654 = vmatmul.bf16.gmra.mxu1 %v857_v7 }
  0x33   :  { %673 = vmatmul.bf16.gmra.mxu2 %v861_v8  ;;  %721 = vmatpush.bf16.msrb.mxu1 %v1197_v10 }
  0x34   :  { %740 = vmatpush.bf16.msrb.mxu2 %v1205_v4  ;;  %692 = vmatmul.bf16.gmra.mxu3 %v865_v9 }
  0x35   :  { %759 = vmatpush.bf16.msrb.mxu3 %v1213_v11 }
  0x36   :  { %703 = vmatpush.bf16.msrb.mxu0 %v1188_v13 }
  0x37   :  { %722 = vmatpush.bf16.msrb.mxu1 %v1196_v14 }
  0x38   :  { %741 = vmatpush.bf16.msrb.mxu2 %v1204_v12 }
  0x39   :  { %760 = vmatpush.bf16.msrb.mxu3 %v1212_v15 }
  0x3a   :  { %704 = vmatpush.bf16.msrb.mxu0 %v1187_v17 }
  0x3b   :  { %723 = vmatpush.bf16.msrb.mxu1 %v1195_v18 }
  0x3c   :  { %742 = vmatpush.bf16.msrb.mxu2 %v1203_v16 }
  0x3d   :  { %761 = vmatpush.bf16.msrb.mxu3 %v1211_v19 }
  0x3e   :  { %705 = vmatpush.bf16.msrb.mxu0 %v1186_v21 }
  0x3f   :  { %724 = vmatpush.bf16.msrb.mxu1 %v1194_v22 }
  0x40   :  { %743 = vmatpush.bf16.msrb.mxu2 %v1202_v20 }
  0x41   :  { %762 = vmatpush.bf16.msrb.mxu3 %v1210_v23  ;;  %706 = vmatmul.bf16.vlgmr.msrb.gmra.mxu0 %v837_v32 }
  0x42   :  { %725 = vmatmul.bf16.vlgmr.msrb.gmra.mxu1 %v841_v33 }
  0x43   :  { %744 = vmatmul.bf16.vlgmr.msrb.gmra.mxu2 %v845_v34 }
  0x44   :  { %763 = vmatmul.bf16.vlgmr.msrb.gmra.mxu3 %v849_v35 }
  0x51   :  { %711 = vmatmul.bf16.gmra.mxu0 %v869_v44 }
  0x52   :  { %730 = vmatmul.bf16.gmra.mxu1 %v873_v45 }
  0x53   :  { %749 = vmatmul.bf16.gmra.mxu2 %v877_v46 }
  0x54   :  { %768 = vmatmul.bf16.gmra.mxu3 %v881_v47 }
  0x9e   :  { %v631_v48 = vpop.f32.mrf.mxu0 }
  0x9f   :  { %v650_v49 = vpop.f32.mrf.mxu1 }
  0xa0   :  { %v651_v0 = vadd.f32 %v650_v49, %v631_v48 }
  0xa6   :  { %v669_v50 = vpop.f32.mrf.mxu2  ;;  %v633_v52 = vpop.f32.mrf.mxu0 }
  0xa7   :  { %v688_v51 = vpop.f32.mrf.mxu3  ;;  %v652_v53 = vpop.f32.mrf.mxu1  ;;  %v670_v3 = vadd.f32 %v669_v50, %v651_v0 }
  0xa8   :  { %v653_v4 = vadd.f32 %v652_v53, %v633_v52 }
  0xa9   :  { %v689_v6 = vadd.f32 %v688_v51, %v670_v3 }
  0xae   :  { %v671_v54 = vpop.f32.mrf.mxu2  ;;  %v636_v56 = vpop.f32.mrf.mxu0 }
  0xaf   :  { %v690_v55 = vpop.f32.mrf.mxu3  ;;  %v655_v57 = vpop.f32.mrf.mxu1  ;;  %v672_v5 = vadd.f32 %v671_v54, %v653_v4 }
  0xb0   :  { %v656_v13 = vadd.f32 %v655_v57, %v636_v56 }
  0xb1   :  { %v691_v8 = vadd.f32 %v690_v55, %v672_v5 }
  0xb6   :  { %v674_v58 = vpop.f32.mrf.mxu2  ;;  %v638_v60 = vpop.f32.mrf.mxu0 }
  0xb7   :  { %v693_v59 = vpop.f32.mrf.mxu3  ;;  %v657_v61 = vpop.f32.mrf.mxu1  ;;  %v675_v15 = vadd.f32 %v674_v58, %v656_v13 }
  0xb8   :  { %v658_v24 = vadd.f32 %v657_v61, %v638_v60 }
  0xb9   :  { %v694_v20 = vadd.f32 %v693_v59, %v675_v15 }
  0xbe   :  { %v676_v62 = vpop.f32.mrf.mxu2  ;;  %v707_v1 = vpop.f32.mrf.mxu0 }
  0xbf   :  { %v695_v63 = vpop.f32.mrf.mxu3  ;;  %v726_v2 = vpop.f32.mrf.mxu1  ;;  %v708_v9 = vadd.f32 %v707_v1, %v689_v6  ;;  %v677_v29 = vadd.f32 %v676_v62, %v658_v24 }
  0xc1   :  { %v727_v16 = vadd.f32 %v726_v2, %v708_v9  ;;  %v696_v33 = vadd.f32 %v695_v63, %v677_v29 }
  0xc6   :  { %v745_v7 = vpop.f32.mrf.mxu2  ;;  %v709_v11 = vpop.f32.mrf.mxu0 }
  0xc7   :  { %v764_v10 = vpop.f32.mrf.mxu3  ;;  %v728_v12 = vpop.f32.mrf.mxu1  ;;  %v710_v14 = vadd.f32 %v709_v11, %v691_v8  ;;  %v746_v17 = vadd.f32 %v745_v7, %v727_v16 }
  0xc9   :  { %v729_v18 = vadd.f32 %v728_v12, %v710_v14  ;;  %v765_v25 = vadd.f32 %v764_v10, %v746_v17 }
  0xcb   :  { %v791_v43 = vmul.f32 %v765_v25, %v765_v25 }
  0xce   :  { %v747_v19 = vpop.f32.mrf.mxu2  ;;  %v712_v23 = vpop.f32.mrf.mxu0 }
  0xcf   :  { %v748_v21 = vadd.f32 %v747_v19, %v729_v18  ;;  %v766_v22 = vpop.f32.mrf.mxu3  ;;  %v713_v27 = vadd.f32 %v712_v23, %v694_v20  ;;  %v731_v28 = vpop.f32.mrf.mxu1 }
  0xd1   :  { %v767_v26 = vadd.f32 %v766_v22, %v748_v21  ;;  %v732_v31 = vadd.f32 %v731_v28, %v713_v27 }
  0xd3   :  { %v1221_v30 = vpack.c.bf16 %v767_v26, %v765_v25  ;;  %v792_v40 = vmul.f32 %v767_v26, %v767_v26  ;;  %v782_v44 = vadd.f32 %v767_v26, %v765_v25 }
  0xd5   :  { %1222 = vst [vmem:[%s1556_s2] sm:$0xff] %v1221_v30   ;;  %v795_v48 = vadd.f32 %v792_v40, %v791_v43 }
  0xd6   :  { %v750_v32 = vpop.f32.mrf.mxu2  ;;  %v714_v36 = vpop.f32.mrf.mxu0 }
  0xd7   :  { %v751_v34 = vadd.f32 %v750_v32, %v732_v31  ;;  %v769_v35 = vpop.f32.mrf.mxu3  ;;  %v715_v37 = vadd.f32 %v714_v36, %v696_v33  ;;  %v733_v39 = vpop.f32.mrf.mxu1 }
  0xd9   :  { %v770_v38 = vadd.f32 %v769_v35, %v751_v34  ;;  %v734_v41 = vadd.f32 %v733_v39, %v715_v37 }
  0xdb   :  { %v793_v45 = vmul.f32 %v770_v38, %v770_v38  ;;  %v783_v49 = vadd.f32 %v782_v44, %v770_v38 }
  0xdd   :  { %v796_v51 = vadd.f32 %v795_v48, %v793_v45 }
  0xde   :  { %v752_v42 = vpop.f32.mrf.mxu2 }
  0xdf   :  { %v753_v46 = vadd.f32 %v752_v42, %v734_v41  ;;  %v771_v47 = vpop.f32.mrf.mxu3 }
  0xe1   :  { %v772_v50 = vadd.f32 %v771_v47, %v753_v46 }
  0xe3   :  { %v1226_v52 = vpack.c.bf16 %v772_v50, %v770_v38  ;;  %v784_v53 = vadd.f32 %v783_v49, %v772_v50  ;;  %v794_v54 = vmul.f32 %v772_v50, %v772_v50 }
  0xe5   :  { %1228 = vst [vmem:[%s1556_s2 + $0x8] sm:$0xff] %v1226_v52   ;;  %v785_v55 = vrot.slane %v784_v53, 4  ;;  %v797_v56 = vadd.f32 %v796_v51, %v794_v54 }
  0xe7   :  { %v786_v57 = vadd.f32 %v785_v55, %v784_v53  ;;  %v798_v58 = vrot.slane %v797_v56, 4 }
  0xe9   :  { %v787_v59 = vrot.slane %v786_v57, 2  ;;  %v799_v60 = vadd.f32 %v798_v58, %v797_v56 }
  0xeb   :  { %v788_v61 = vadd.f32 %v787_v59, %v786_v57  ;;  %v800_v62 = vrot.slane %v799_v60, 2 }
  0xed   :  { %v789_v63 = vrot.slane %v788_v61, 1  ;;  %v801_v0 = vadd.f32 %v800_v62, %v799_v60 }
  0xef   :  { %v790_v1 = vadd.f32 %v789_v63, %v788_v61  ;;  %v802_v2 = vrot.slane %v801_v0, 1 }
  0xf1   :  { %v803_v3 = vadd.f32 %v802_v2, %v801_v0  ;;  %804 = vst [vmem:[%s1557_s3] sm:$0xff] %v790_v1 }
  0xf3   :  { %805 = vst [vmem:[%s1558_s4] sm:$0xff] %v803_v3 }

// kernel: discriminator_forward.8
= control target key start
LH: loop header
LB: loop body
LE: loop exit
PB: predicated region body
PF: predicated region fallthrough
CT: control target
= control target key end

     0   :  { %s122_s0 = inlined_call_operand.vmem [shape: bf16[32,128], index: 0, kind: input, shape index: {}]   ;;  %s123_s1 = inlined_call_operand.vmem [shape: f32[1,128], index: 1, kind: input, shape index: {}]   ;;  %s124_s2 = inlined_call_operand.vmem [shape: f32[1,128], index: 2, kind: input, shape index: {}]   ;;  %s125_s3 = inlined_call_operand.vmem [shape: bf16[32,128], index: 3, kind: output, shape index: {}]  }
   0x1   :  { %v63_v0 = vld [vmem:[%s122_s0] sm:$0xff]   ;;  %v80_v5 = vld [vmem:[%s122_s0 + $0x8] sm:$0xff]  }
   0x2   :  { %v82_v1 = vld [vmem:[%s123_s1] ss:$0 sm:$0xff]  ;;  %v64_v2 = vunpack.c.l.bf16 %v63_v0  ;;  %v65_v3 = vunpack.c.h.bf16 %v63_v0  ;;  %v68_v6 = vunpack.c.l.bf16 %v80_v5  ;;  %v69_v7 = vunpack.c.h.bf16 %v80_v5 }
   0x3   :  { %v83_v4 = vld [vmem:[%s124_s2] ss:$0 sm:$0xff] }
   0x4   :  { %v26_v8 = vmul.f32 %v82_v1, %v64_v2  ;;  %v27_v9 = vmul.f32 %v82_v1, %v65_v3  ;;  %v28_v10 = vmul.f32 %v82_v1, %v68_v6  ;;  %v29_v11 = vmul.f32 %v82_v1, %v69_v7 }
   0x6   :  { %v34_v12 = vadd.f32 %v83_v4, %v26_v8  ;;  %v35_v13 = vadd.f32 %v83_v4, %v27_v9  ;;  %v36_v14 = vadd.f32 %v83_v4, %v28_v10  ;;  %v37_v15 = vadd.f32 %v83_v4, %v29_v11 }
   0x8   :  { %vm38_vm0 = vcmp.gt.f32.partialorder %v34_v12, 0.0  ;;  %vm39_vm1 = vcmp.gt.f32.partialorder %v35_v13, 0.0  ;;  %v42_v16 = vmul.f32 0.2, %v34_v12  ;;  %v43_v17 = vmul.f32 0.2, %v35_v13 }
   0x9   :  { %vm40_vm2 = vcmp.gt.f32.partialorder %v36_v14, 0.0  ;;  %vm41_vm3 = vcmp.gt.f32.partialorder %v37_v15, 0.0  ;;  %v44_v18 = vmul.f32 0.2, %v36_v14  ;;  %v45_v19 = vmul.f32 0.2, %v37_v15 }
   0xa   :  { %v46_v20 = vsel %vm38_vm0, %v34_v12, %v42_v16  ;;  %v47_v21 = vsel %vm39_vm1, %v35_v13, %v43_v17 }
   0xb   :  { %v73_v22 = vpack.c.bf16 %v47_v21, %v46_v20  ;;  %v48_v23 = vsel %vm40_vm2, %v36_v14, %v44_v18  ;;  %v49_v24 = vsel %vm41_vm3, %v37_v15, %v45_v19 }
   0xc   :  { %v78_v25 = vpack.c.bf16 %v49_v24, %v48_v23 }
   0xd   :  { %74 = vst [vmem:[%s125_s3] sm:$0xff] %v73_v22  }
   0xe   :  { %81 = vst [vmem:[%s125_s3 + $0x8] sm:$0xff] %v78_v25  }

// kernel: tile.33
= control target key start
LH: loop header
LB: loop body
LE: loop exit
PB: predicated region body
PF: predicated region fallthrough
CT: control target
= control target key end

     0   :  { %s22_s0 = inlined_call_operand.vmem [shape: f32[64], index: 0, kind: input, shape index: {}]   ;;  %s23_s1 = inlined_call_operand.vmem [shape: f32[2,64], index: 1, kind: output, shape index: {}]  }
   0x1   :  { %v4_v0 = vld [vmem:[%s22_s0] ss:$0 sm:$0xff] }
   0x2   :  { %5 = vst [vmem:[%s23_s1] sm:$0x3] %v4_v0 }

// kernel: tile.34
= control target key start
LH: loop header
LB: loop body
LE: loop exit
PB: predicated region body
PF: predicated region fallthrough
CT: control target
= control target key end

     0   :  { %vm7_vm0 = vcmask 523264   ;;  %vm13_vm1 = vcmask 1048064   ;;  %s39_s0 = inlined_call_operand.vmem [shape: f32[2,64], index: 0, kind: input, shape index: {}]   ;;  %s40_s1 = inlined_call_operand.vmem [shape: f32[1,128], index: 1, kind: output, shape index: {}]  }
   0x1   :  { %v4_v0 = vld [vmem:[%s39_s0] sm:$0x3]  ;;  %s22_s0 = smov 64  }
   0x2   :  { %5 = vst [vmem:[#allocation1] sm:$0x3] %v4_v0 }
   0x9   :  { %v10_v1 = vld [vmem:[#allocation1 + $0x1] sm:$0x1]   ;;  %v6_v2 = vld [vmem:[#allocation1] sm:$0x1]  }
   0xa   :  { %11 = vrot.lane.b32.xlu0 %v10_v1, %s22_s0  ;;  %8 = vst.msk [vmem:[#allocation0] sm:$0x1] %vm7_vm0, %v6_v2  }
  0x7c   :  { %v12_v3 = vpop.permute.xlu0 %11  }
  0x7d   :  { %14 = vst.msk [vmem:[#allocation0] sm:$0x1] %vm13_vm1, %v12_v3  }
  0x84   :  { %v17_v4 = vld [vmem:[#allocation0] sm:$0x1] }
  0x85   :  { %20 = vst [vmem:[%s40_s1] sm:$0x1] %v17_v4 }

// kernel: discriminator_forward.10
= control target key start
LH: loop header
LB: loop body
LE: loop exit
PB: predicated region body
PF: predicated region fallthrough
CT: control target
= control target key end

     0   :  { %s87_s0 = inlined_call_operand.vmem [shape: bf16[16,128], index: 0, kind: input, shape index: {}]   ;;  %s88_s1 = inlined_call_operand.vmem [shape: f32[1,128], index: 1, kind: input, shape index: {}]   ;;  %s89_s2 = inlined_call_operand.vmem [shape: f32[1,128], index: 2, kind: input, shape index: {}]   ;;  %s90_s3 = inlined_call_operand.vmem [shape: bf16[16,128], index: 3, kind: output, shape index: {}]  }
   0x1   :  { %v45_v0 = vld [vmem:[%s87_s0] sm:$0xff]  }
   0x2   :  { %v53_v1 = vld [vmem:[%s88_s1] ss:$0 sm:$0xff]  ;;  %v46_v2 = vunpack.c.l.bf16 %v45_v0  ;;  %v47_v3 = vunpack.c.h.bf16 %v45_v0 }
   0x3   :  { %v54_v4 = vld [vmem:[%s89_s2] ss:$0 sm:$0xff] }
   0x4   :  { %v22_v5 = vmul.f32 %v53_v1, %v46_v2  ;;  %v23_v6 = vmul.f32 %v53_v1, %v47_v3 }
   0x6   :  { %v28_v7 = vadd.f32 %v54_v4, %v22_v5  ;;  %v29_v8 = vadd.f32 %v54_v4, %v23_v6 }
   0x8   :  { %vm30_vm0 = vcmp.gt.f32.partialorder %v28_v7, 0.0  ;;  %vm31_vm1 = vcmp.gt.f32.partialorder %v29_v8, 0.0  ;;  %v32_v9 = vmul.f32 0.2, %v28_v7  ;;  %v33_v10 = vmul.f32 0.2, %v29_v8 }
   0xa   :  { %v34_v11 = vsel %vm30_vm0, %v28_v7, %v32_v9  ;;  %v35_v12 = vsel %vm31_vm1, %v29_v8, %v33_v10 }
   0xb   :  { %v51_v13 = vpack.c.bf16 %v35_v12, %v34_v11 }
   0xd   :  { %52 = vst [vmem:[%s90_s3] sm:$0xff] %v51_v13  }

// kernel: discriminator_forward.9
= control target key start
LH: loop header
LB: loop body
LE: loop exit
PB: predicated region body
PF: predicated region fallthrough
CT: control target
= control target key end

     0   :  { %s1359_s1 = inlined_call_operand.vmem [shape: bf16[1024,128], index: 1, kind: input, shape index: {}]   ;;  %s1360_s0 = inlined_call_operand.vmem [shape: bf16[16,1024], index: 0, kind: input, shape index: {}]   ;;  %s1361_s2 = inlined_call_operand.vmem [shape: bf16[16,128], index: 2, kind: output, shape index: {0}]   ;;  %s1362_s3 = inlined_call_operand.vmem [shape: f32[8,128], index: 3, kind: output, shape index: {1}]   ;;  %s1363_s4 = inlined_call_operand.vmem [shape: f32[8,128], index: 4, kind: output, shape index: {2}]  }
   0x1   :  { %v1023_v0 = vld [vmem:[%s1359_s1 + $0x38] sm:$0xff]  ;;  %v1022_v4 = vld [vmem:[%s1359_s1 + $0x30] sm:$0xff]  ;;  %v1021_v8 = vld [vmem:[%s1359_s1 + $0x28] sm:$0xff] }
   0x2   :  { %v1031_v1 = vld [vmem:[%s1359_s1 + $0x78] sm:$0xff]  ;;  %574 = vmatpush.bf16.msra.mxu0 %v1023_v0  ;;  %v1030_v5 = vld [vmem:[%s1359_s1 + $0x70] sm:$0xff]  ;;  %v1029_v9 = vld [vmem:[%s1359_s1 + $0x68] sm:$0xff] }
   0x3   :  { %v1039_v2 = vld [vmem:[%s1359_s1 + $0xb8] sm:$0xff]  ;;  %588 = vmatpush.bf16.msra.mxu1 %v1031_v1  ;;  %v1038_v6 = vld [vmem:[%s1359_s1 + $0xb0] sm:$0xff]  ;;  %v1037_v10 = vld [vmem:[%s1359_s1 + $0xa8] sm:$0xff] }
   0x4   :  { %v1047_v3 = vld [vmem:[%s1359_s1 + $0xf8] sm:$0xff]  ;;  %602 = vmatpush.bf16.msra.mxu2 %v1039_v2  ;;  %v1046_v7 = vld [vmem:[%s1359_s1 + $0xf0] sm:$0xff]  ;;  %v1045_v11 = vld [vmem:[%s1359_s1 + $0xe8] sm:$0xff] }
   0x5   :  { %616 = vmatpush.bf16.msra.mxu3 %v1047_v3  ;;  %v1020_v12 = vld [vmem:[%s1359_s1 + $0x20] sm:$0xff]  ;;  %v1019_v16 = vld [vmem:[%s1359_s1 + $0x18] sm:$0xff]  ;;  %v1018_v20 = vld [vmem:[%s1359_s1 + $0x10] sm:$0xff] }
   0x6   :  { %575 = vmatpush.bf16.msra.mxu0 %v1022_v4  ;;  %v1028_v13 = vld [vmem:[%s1359_s1 + $0x60] sm:$0xff]  ;;  %v1027_v17 = vld [vmem:[%s1359_s1 + $0x58] sm:$0xff]  ;;  %v1026_v21 = vld [vmem:[%s1359_s1 + $0x50] sm:$0xff] }
   0x7   :  { %589 = vmatpush.bf16.msra.mxu1 %v1030_v5  ;;  %v1036_v14 = vld [vmem:[%s1359_s1 + $0xa0] sm:$0xff]  ;;  %v1035_v18 = vld [vmem:[%s1359_s1 + $0x98] sm:$0xff]  ;;  %v1034_v22 = vld [vmem:[%s1359_s1 + $0x90] sm:$0xff] }
   0x8   :  { %603 = vmatpush.bf16.msra.mxu2 %v1038_v6  ;;  %v1044_v15 = vld [vmem:[%s1359_s1 + $0xe0] sm:$0xff]  ;;  %v1043_v19 = vld [vmem:[%s1359_s1 + $0xd8] sm:$0xff]  ;;  %v1042_v23 = vld [vmem:[%s1359_s1 + $0xd0] sm:$0xff] }
   0x9   :  { %617 = vmatpush.bf16.msra.mxu3 %v1046_v7  ;;  %v1017_v24 = vld [vmem:[%s1359_s1 + $0x8] sm:$0xff]  ;;  %v1016_v28 = vld [vmem:[%s1359_s1] sm:$0xff]  ;;  %v1055_v32 = vld [vmem:[%s1359_s1 + $0x138] sm:$0xff] }
   0xa   :  { %576 = vmatpush.bf16.msra.mxu0 %v1021_v8  ;;  %v1025_v25 = vld [vmem:[%s1359_s1 + $0x48] sm:$0xff]  ;;  %v1024_v29 = vld [vmem:[%s1359_s1 + $0x40] sm:$0xff]  ;;  %v1063_v33 = vld [vmem:[%s1359_s1 + $0x178] sm:$0xff] }
   0xb   :  { %590 = vmatpush.bf16.msra.mxu1 %v1029_v9  ;;  %v1033_v26 = vld [vmem:[%s1359_s1 + $0x88] sm:$0xff]  ;;  %v1032_v30 = vld [vmem:[%s1359_s1 + $0x80] sm:$0xff]  ;;  %v1071_v42 = vld [vmem:[%s1359_s1 + $0x1b8] sm:$0xff] }
   0xc   :  { %604 = vmatpush.bf16.msra.mxu2 %v1037_v10  ;;  %v1041_v27 = vld [vmem:[%s1359_s1 + $0xc8] sm:$0xff]  ;;  %v1040_v31 = vld [vmem:[%s1359_s1 + $0xc0] sm:$0xff]  ;;  %v1079_v43 = vld [vmem:[%s1359_s1 + $0x1f8] sm:$0xff] }
   0xd   :  { %618 = vmatpush.bf16.msra.mxu3 %v1045_v11  ;;  %v730_v34 = vld [vmem:[%s1360_s0 + $0x8] sm:$0xf]  ;;  %v1009_v36 = vld [vmem:[%s1360_s0 + $0xc] sm:$0xf]  ;;  %v722_v38 = vld [vmem:[%s1360_s0] sm:$0xf] }
   0xe   :  { %577 = vmatpush.bf16.msra.mxu0 %v1020_v12  ;;  %v1013_v35 = vld [vmem:[%s1360_s0 + $0x24] sm:$0xf0]  ;;  %v732_v37 = vld [vmem:[%s1360_s0 + $0x28] sm:$0xf0]  ;;  %v1012_v39 = vld [vmem:[%s1360_s0 + $0x1c] sm:$0xf0] }
   0xf   :  { %591 = vmatpush.bf16.msra.mxu1 %v1028_v13  ;;  %v1008_v40 = vld [vmem:[%s1360_s0 + $0x4] sm:$0xf]  ;;  %v731_v44 = vor.u32 %v1013_v35, %v730_v34  ;;  %v735_v45 = vor.u32 %v1009_v36, %v732_v37  ;;  %v723_v46 = vor.u32 %v1012_v39, %v722_v38  ;;  %v1054_v48 = vld [vmem:[%s1359_s1 + $0x130] sm:$0xff]  ;;  %v1053_v52 = vld [vmem:[%s1359_s1 + $0x128] sm:$0xff] }
  0x10   :  { %605 = vmatpush.bf16.msra.mxu2 %v1036_v14  ;;  %v724_v41 = vld [vmem:[%s1360_s0 + $0x20] sm:$0xf0]  ;;  %v1062_v49 = vld [vmem:[%s1359_s1 + $0x170] sm:$0xff]  ;;  %v1061_v53 = vld [vmem:[%s1359_s1 + $0x168] sm:$0xff] }
  0x11   :  { %619 = vmatpush.bf16.msra.mxu3 %v1044_v15  ;;  %v727_v47 = vor.u32 %v1008_v40, %v724_v41  ;;  %v1070_v50 = vld [vmem:[%s1359_s1 + $0x1b0] sm:$0xff]  ;;  %v1069_v54 = vld [vmem:[%s1359_s1 + $0x1a8] sm:$0xff]  ;;  %v1052_v56 = vld [vmem:[%s1359_s1 + $0x120] sm:$0xff] }
  0x12   :  { %578 = vmatpush.bf16.msra.mxu0 %v1019_v16  ;;  %v1078_v51 = vld [vmem:[%s1359_s1 + $0x1f0] sm:$0xff]  ;;  %v1077_v55 = vld [vmem:[%s1359_s1 + $0x1e8] sm:$0xff]  ;;  %v1060_v57 = vld [vmem:[%s1359_s1 + $0x160] sm:$0xff] }
  0x13   :  { %592 = vmatpush.bf16.msra.mxu1 %v1027_v17  ;;  %v1068_v58 = vld [vmem:[%s1359_s1 + $0x1a0] sm:$0xff]  ;;  %v1051_v60 = vld [vmem:[%s1359_s1 + $0x118] sm:$0xff]  ;;  %v1050_v0 = vld [vmem:[%s1359_s1 + $0x110] sm:$0xff] }
  0x14   :  { %606 = vmatpush.bf16.msra.mxu2 %v1035_v18  ;;  %v1076_v59 = vld [vmem:[%s1359_s1 + $0x1e0] sm:$0xff]  ;;  %v1059_v61 = vld [vmem:[%s1359_s1 + $0x158] sm:$0xff]  ;;  %v1058_v1 = vld [vmem:[%s1359_s1 + $0x150] sm:$0xff] }
  0x15   :  { %620 = vmatpush.bf16.msra.mxu3 %v1043_v19  ;;  %v1067_v62 = vld [vmem:[%s1359_s1 + $0x198] sm:$0xff]  ;;  %v1066_v2 = vld [vmem:[%s1359_s1 + $0x190] sm:$0xff]  ;;  %v1049_v4 = vld [vmem:[%s1359_s1 + $0x108] sm:$0xff] }
  0x16   :  { %579 = vmatpush.bf16.msra.mxu0 %v1018_v20  ;;  %v1075_v63 = vld [vmem:[%s1359_s1 + $0x1d8] sm:$0xff]  ;;  %v1074_v3 = vld [vmem:[%s1359_s1 + $0x1d0] sm:$0xff]  ;;  %v1057_v5 = vld [vmem:[%s1359_s1 + $0x148] sm:$0xff] }
  0x17   :  { %593 = vmatpush.bf16.msra.mxu1 %v1026_v21  ;;  %v1065_v6 = vld [vmem:[%s1359_s1 + $0x188] sm:$0xff]  ;;  %v1048_v8 = vld [vmem:[%s1359_s1 + $0x100] sm:$0xff]  ;;  %v738_v12 = vld [vmem:[%s1360_s0 + $0x10] sm:$0xf] }
  0x18   :  { %607 = vmatpush.bf16.msra.mxu2 %v1034_v22  ;;  %v1073_v7 = vld [vmem:[%s1359_s1 + $0x1c8] sm:$0xff]  ;;  %v1056_v9 = vld [vmem:[%s1359_s1 + $0x140] sm:$0xff]  ;;  %v1014_v13 = vld [vmem:[%s1360_s0 + $0x2c] sm:$0xf0] }
  0x19   :  { %621 = vmatpush.bf16.msra.mxu3 %v1042_v23  ;;  %v1064_v10 = vld [vmem:[%s1359_s1 + $0x180] sm:$0xff]  ;;  %v1010_v14 = vld [vmem:[%s1360_s0 + $0x14] sm:$0xf]  ;;  %v746_v16 = vld [vmem:[%s1360_s0 + $0x18] sm:$0xf]  ;;  %v739_v20 = vor.u32 %v1014_v13, %v738_v12 }
  0x1a   :  { %580 = vmatpush.bf16.msra.mxu0 %v1017_v24  ;;  %v1072_v11 = vld [vmem:[%s1359_s1 + $0x1c0] sm:$0xff]  ;;  %v740_v15 = vld [vmem:[%s1360_s0 + $0x30] sm:$0xf0]  ;;  %v1015_v17 = vld [vmem:[%s1360_s0 + $0x34] sm:$0xf0] }
  0x1b   :  { %594 = vmatpush.bf16.msra.mxu1 %v1025_v25  ;;  %v1011_v18 = vld [vmem:[%s1360_s0 + $0x1c] sm:$0xf]  ;;  %v743_v21 = vor.u32 %v1010_v14, %v740_v15  ;;  %v747_v22 = vor.u32 %v1015_v17, %v746_v16 }
  0x1c   :  { %608 = vmatpush.bf16.msra.mxu2 %v1033_v26  ;;  %v748_v19 = vld [vmem:[%s1360_s0 + $0x38] sm:$0xf0] }
  0x1d   :  { %622 = vmatpush.bf16.msra.mxu3 %v1041_v27  ;;  %v751_v23 = vor.u32 %v1011_v18, %v748_v19 }
  0x1e   :  { %581 = vmatpush.bf16.msra.mxu0 %v1016_v28 }
  0x1f   :  { %595 = vmatpush.bf16.msra.mxu1 %v1024_v29 }
  0x20   :  { %609 = vmatpush.bf16.msra.mxu2 %v1032_v30 }
  0x21   :  { %623 = vmatpush.bf16.msra.mxu3 %v1040_v31  ;;  %582 = vmatmul.bf16.vlgmr.msra.gmra.mxu0 %v723_v46 }
  0x22   :  { %630 = vmatpush.bf16.msrb.mxu0 %v1055_v32  ;;  %596 = vmatmul.bf16.vlgmr.msra.gmra.mxu1 %v727_v47 }
  0x23   :  { %644 = vmatpush.bf16.msrb.mxu1 %v1063_v33  ;;  %610 = vmatmul.bf16.vlgmr.msra.gmra.mxu2 %v731_v44 }
  0x24   :  { %658 = vmatpush.bf16.msrb.mxu2 %v1071_v42  ;;  %624 = vmatmul.bf16.vlgmr.msra.gmra.mxu3 %v735_v45 }
  0x25   :  { %672 = vmatpush.bf16.msrb.mxu3 %v1079_v43 }
  0x26   :  { %631 = vmatpush.bf16.msrb.mxu0 %v1054_v48 }
  0x27   :  { %645 = vmatpush.bf16.msrb.mxu1 %v1062_v49 }
  0x28   :  { %659 = vmatpush.bf16.msrb.mxu2 %v1070_v50 }
  0x29   :  { %673 = vmatpush.bf16.msrb.mxu3 %v1078_v51 }
  0x2a   :  { %632 = vmatpush.bf16.msrb.mxu0 %v1053_v52 }
  0x2b   :  { %646 = vmatpush.bf16.msrb.mxu1 %v1061_v53 }
  0x2c   :  { %660 = vmatpush.bf16.msrb.mxu2 %v1069_v54 }
  0x2d   :  { %674 = vmatpush.bf16.msrb.mxu3 %v1077_v55 }
  0x2e   :  { %633 = vmatpush.bf16.msrb.mxu0 %v1052_v56 }
  0x2f   :  { %647 = vmatpush.bf16.msrb.mxu1 %v1060_v57 }
  0x30   :  { %661 = vmatpush.bf16.msrb.mxu2 %v1068_v58 }
  0x31   :  { %675 = vmatpush.bf16.msrb.mxu3 %v1076_v59 }
  0x32   :  { %634 = vmatpush.bf16.msrb.mxu0 %v1051_v60 }
  0x33   :  { %648 = vmatpush.bf16.msrb.mxu1 %v1059_v61 }
  0x34   :  { %662 = vmatpush.bf16.msrb.mxu2 %v1067_v62 }
  0x35   :  { %676 = vmatpush.bf16.msrb.mxu3 %v1075_v63 }
  0x36   :  { %635 = vmatpush.bf16.msrb.mxu0 %v1050_v0 }
  0x37   :  { %649 = vmatpush.bf16.msrb.mxu1 %v1058_v1 }
  0x38   :  { %663 = vmatpush.bf16.msrb.mxu2 %v1066_v2 }
  0x39   :  { %677 = vmatpush.bf16.msrb.mxu3 %v1074_v3 }
  0x3a   :  { %636 = vmatpush.bf16.msrb.mxu0 %v1049_v4 }
  0x3b   :  { %650 = vmatpush.bf16.msrb.mxu1 %v1057_v5 }
  0x3c   :  { %664 = vmatpush.bf16.msrb.mxu2 %v1065_v6 }
  0x3d   :  { %678 = vmatpush.bf16.msrb.mxu3 %v1073_v7 }
  0x3e   :  { %637 = vmatpush.bf16.msrb.mxu0 %v1048_v8 }
  0x3f   :  { %651 = vmatpush.bf16.msrb.mxu1 %v1056_v9 }
  0x40   :  { %665 = vmatpush.bf16.msrb.mxu2 %v1064_v10 }
  0x41   :  { %679 = vmatpush.bf16.msrb.mxu3 %v1072_v11  ;;  %638 = vmatmul.bf16.vlgmr.msrb.gmra.mxu0 %v739_v20 }
  0x42   :  { %652 = vmatmul.bf16.vlgmr.msrb.gmra.mxu1 %v743_v21 }
  0x43   :  { %666 = vmatmul.bf16.vlgmr.msrb.gmra.mxu2 %v747_v22 }
  0x44   :  { %680 = vmatmul.bf16.vlgmr.msrb.gmra.mxu3 %v751_v23 }
  0x9e   :  { %v583_v24 = vpop.f32.mrf.mxu0 }
  0x9f   :  { %v597_v25 = vpop.f32.mrf.mxu1 }
  0xa0   :  { %v598_v30 = vadd.f32 %v597_v25, %v583_v24 }
  0xa6   :  { %v611_v26 = vpop.f32.mrf.mxu2  ;;  %v585_v28 = vpop.f32.mrf.mxu0 }
  0xa7   :  { %v625_v27 = vpop.f32.mrf.mxu3  ;;  %v599_v29 = vpop.f32.mrf.mxu1  ;;  %v612_v33 = vadd.f32 %v611_v26, %v598_v30 }
  0xa8   :  { %v600_v34 = vadd.f32 %v599_v29, %v585_v28 }
  0xa9   :  { %v626_v37 = vadd.f32 %v625_v27, %v612_v33 }
  0xae   :  { %v613_v31 = vpop.f32.mrf.mxu2 }
  0xaf   :  { %v627_v32 = vpop.f32.mrf.mxu3  ;;  %v614_v38 = vadd.f32 %v613_v31, %v600_v34 }
  0xb1   :  { %v628_v42 = vadd.f32 %v627_v32, %v614_v38 }
  0xbe   :  { %v639_v35 = vpop.f32.mrf.mxu0 }
  0xbf   :  { %v653_v36 = vpop.f32.mrf.mxu1  ;;  %v640_v39 = vadd.f32 %v639_v35, %v626_v37 }
  0xc1   :  { %v654_v44 = vadd.f32 %v653_v36, %v640_v39 }
  0xc6   :  { %v667_v40 = vpop.f32.mrf.mxu2  ;;  %v641_v43 = vpop.f32.mrf.mxu0 }
  0xc7   :  { %v681_v41 = vpop.f32.mrf.mxu3  ;;  %v642_v45 = vadd.f32 %v641_v43, %v628_v42  ;;  %v668_v46 = vadd.f32 %v667_v40, %v654_v44  ;;  %v655_v47 = vpop.f32.mrf.mxu1 }
  0xc9   :  { %v656_v48 = vadd.f32 %v655_v47, %v642_v45  ;;  %v682_v50 = vadd.f32 %v681_v41, %v668_v46 }
  0xcb   :  { %v697_v54 = vmul.f32 %v682_v50, %v682_v50 }
  0xce   :  { %v669_v49 = vpop.f32.mrf.mxu2 }
  0xcf   :  { %v670_v51 = vadd.f32 %v669_v49, %v656_v48  ;;  %v683_v52 = vpop.f32.mrf.mxu3 }
  0xd1   :  { %v684_v53 = vadd.f32 %v683_v52, %v670_v51 }
  0xd3   :  { %v1083_v55 = vpack.c.bf16 %v684_v53, %v682_v50  ;;  %v690_v56 = vadd.f32 %v684_v53, %v682_v50  ;;  %v698_v57 = vmul.f32 %v684_v53, %v684_v53 }
  0xd5   :  { %1084 = vst [vmem:[%s1361_s2] sm:$0xff] %v1083_v55   ;;  %v691_v58 = vrot.slane %v690_v56, 4  ;;  %v699_v59 = vadd.f32 %v698_v57, %v697_v54 }
  0xd7   :  { %v692_v60 = vadd.f32 %v691_v58, %v690_v56  ;;  %v700_v61 = vrot.slane %v699_v59, 4 }
  0xd9   :  { %v693_v62 = vrot.slane %v692_v60, 2  ;;  %v701_v63 = vadd.f32 %v700_v61, %v699_v59 }
  0xdb   :  { %v694_v0 = vadd.f32 %v693_v62, %v692_v60  ;;  %v702_v1 = vrot.slane %v701_v63, 2 }
  0xdd   :  { %v695_v2 = vrot.slane %v694_v0, 1  ;;  %v703_v3 = vadd.f32 %v702_v1, %v701_v63 }
  0xdf   :  { %v696_v4 = vadd.f32 %v695_v2, %v694_v0  ;;  %v704_v5 = vrot.slane %v703_v3, 1 }
  0xe1   :  { %v705_v6 = vadd.f32 %v704_v5, %v703_v3  ;;  %706 = vst [vmem:[%s1362_s3] sm:$0xff] %v696_v4 }
  0xe3   :  { %707 = vst [vmem:[%s1363_s4] sm:$0xff] %v705_v6 }

// kernel: discriminator_forward.11
= control target key start
LH: loop header
LB: loop body
LE: loop exit
PB: predicated region body
PF: predicated region fallthrough
CT: control target
= control target key end

     0   :  { %s281_s9 = smov 0   ;;  %s314_s0 = inlined_call_operand.vmem [shape: bf16[2,1,1024], index: 0, kind: input, shape index: {}]   ;;  %s315_s1 = inlined_call_operand.vmem [shape: f32[1,1024], index: 1, kind: input, shape index: {}]   ;;  %s316_s2 = inlined_call_operand.vmem [shape: f32[2,1], index: 2, kind: output, shape index: {}]  }
   0x1 LB: > { %s287_s10 = sadd.s32 4294967295, %s262_s9   ;;  %p238_p0 = scmp.ge.s32.totalorder %s262_s9, 1  ;;  %s262_s9 = sphi %s281_s9, %s12_s9  }
   0x2   : > { %p106_p1 = scmp.lt.s32.totalorder %s262_s9, 3 }
   0x4   : > { %p107_p2 = pnand %p238_p0, %p106_p1 }
   0x5   : > { %p122_p3 = scmp.lt.s32.totalorder (!%p107_p2), %s287_s10, 1  ;;  %s203_s20 = scalar_lea.vmem (!%p107_p2), %s316_s2, %s287_s10 }
   0x6   : > { %110 = sbr.rel (%p107_p2) target bundleno = 187 (0xbb), region = 28 }
   0xb   : > { %v264_v0 = vmov 857870592   ;;  %v265_v2 = vmov 2003195204   ;;  %s123_s11 = scalar_select %p122_p3, %s287_s10, 1  ;;  %v131_v4 = vld [vmem:[%s315_s1] sm:$0xff] }
   0xc   : > { %v134_v1 = vunpack.c.l.s4 %v264_v0  ;;  %v138_v3 = vunpack.c.l.s4 %v265_v2  ;;  %vm163_vm0 = vcmask 1040384   ;;  %vm204_vm5 = vcmask 0  }
   0xd   : > { %s239_s14 = sshll.u32 %s123_s11, 3 }
   0xe   : > { %v135_v5 = vunpack.c.0.s8 %v134_v1  ;;  %v139_v6 = vunpack.c.0.s8 %v138_v3  ;;  %s125_s17 = scalar_lea.vmem %s314_s0, %s239_s14 }
   0xf   : > { %v126_v9 = vld [vmem:[%s125_s17] sm:$0xff] }
  0x10   : > { %v136_v7 = vperm.slane %v131_v4, %v135_v5  ;;  %v140_v8 = vperm.slane %v131_v4, %v139_v6  ;;  %v127_v10 = vunpack.c.l.bf16 %v126_v9  ;;  %v128_v11 = vunpack.c.h.bf16 %v126_v9 }
  0x12   : > { %v143_v12 = vmul.f32 %v136_v7, %v127_v10  ;;  %v144_v13 = vmul.f32 %v140_v8, %v128_v11 }
  0x14   : > { %v147_v14 = vperm.slane %v143_v12, 0  ;;  %v148_v15 = vperm.slane %v143_v12, 2  ;;  %v149_v16 = vperm.slane %v143_v12, 4  ;;  %v150_v17 = vperm.slane %v143_v12, 6 }
  0x15   : > { %v151_v18 = vperm.slane %v144_v13, 0  ;;  %v152_v23 = vperm.slane %v144_v13, 2  ;;  %v153_v26 = vperm.slane %v144_v13, 4  ;;  %v154_v29 = vperm.slane %v144_v13, 6 }
  0x16   : > { %v164_v19 = vsel %vm163_vm0, %v147_v14, 0.0  ;;  %v165_v20 = vsel %vm163_vm0, %v148_v15, 0.0  ;;  %v167_v21 = vsel %vm163_vm0, %v149_v16, 0.0  ;;  %v169_v24 = vsel %vm163_vm0, %v150_v17, 0.0 }
  0x17   : > { %v166_v22 = vadd.f32 %v165_v20, %v164_v19  ;;  %v171_v27 = vsel %vm163_vm0, %v151_v18, 0.0  ;;  %v173_v30 = vsel %vm163_vm0, %v152_v23, 0.0  ;;  %v175_v32 = vsel %vm163_vm0, %v153_v26, 0.0 }
  0x18   : > { %v177_v34 = vsel %vm163_vm0, %v154_v29, 0.0 }
  0x19   : > { %v168_v25 = vadd.f32 %v167_v21, %v166_v22 }
  0x1b   : > { %v170_v28 = vadd.f32 %v169_v24, %v168_v25 }
  0x1d   : > { %v172_v31 = vadd.f32 %v171_v27, %v170_v28 }
  0x1f   : > { %v174_v33 = vadd.f32 %v173_v30, %v172_v31 }
  0x21   : > { %v176_v35 = vadd.f32 %v175_v32, %v174_v33 }
  0x23   : > { %v178_v36 = vadd.f32 %v177_v34, %v176_v35 }
  0x25   : > { %179 = vadd.xlane.f32.xlu0 %v178_v36 }
  0x98   : > { %v180_v37 = vpop.xlane.xlu0 %179 }
  0x99   : > { %vm181_vm1 = vcmp.gt.f32.partialorder %v180_v37, 0.0  ;;  %v182_v38 = vmul.f32 0.2, %v180_v37 }
  0x9b   : > { %v183_v39 = vsel %vm181_vm1, %v180_v37, %v182_v38 }
  0x9c   : > { %v184_v40 = vsub.f32 0.0, %v183_v39 }
  0x9e   : > { %v185_v41 = vmul.f32 1.442695, %v184_v40 }
  0xa0   : > { %252 = vpow2.f32 %v185_v41 }
  0xa6   : > { %v253_v42 = vpop.eup %252 }
  0xa7   : > { %v187_v43 = vadd.f32 1.0, %v253_v42 }
  0xa9   : > { %254 = vrcp.f32 %v187_v43  ;;  %v199_v47 = vand.u32 2147483648, %v187_v43  ;;  %v197_v49 = vand.u32 2147483647, %v187_v43  ;;  %vm193_vm3 = vweird.f32 %v187_v43 }
  0xab   : > { %v200_v51 = vor.u32 1.1754944e-38, %v199_v47  ;;  %vm198_vm6 = vcmp.eq.f32.partialorder %v197_v49, 8.507059e+37 }
  0xaf   : > { %v255_v44 = vpop.eup %254 }
  0xb0   : > { %v189_v45 = vmul.f32 %v255_v44, %v187_v43  ;;  %vm194_vm2 = vweird.f32 %v255_v44 }
  0xb1   : > { %vm195_vm4 = vmor %vm193_vm3, %vm194_vm2 }
  0xb2   : > { %v190_v46 = vsub.f32 1.0, %v189_v45 }
  0xb4   : > { %v191_v48 = vmul.f32 %v255_v44, %v190_v46 }
  0xb6   : > { %v192_v50 = vadd.f32 %v255_v44, %v191_v48 }
  0xb8   : > { %v196_v52 = vsel %vm195_vm4, %v255_v44, %v192_v50 }
  0xb9   : > { %v201_v53 = vsel %vm198_vm6, %v200_v51, %v196_v52 }
  0xba   : > { %205 = vst.msk [vmem:[%s203_s20] sm:$0x1] %vm204_vm5, %v201_v53 }
  0xbb PF: > { %s12_s9 = sadd.s32 1, %s262_s9  }
  0xbc   : > { %p9_p4 = scmp.ge.s32.totalorder %s12_s9, 4  }
  0xbe   :  { %11 = sbr.rel (!%p9_p4) target bundleno = 1 (0x1), region = 55 }

</bundles_post_ra>
